<compile_context>
chip_gen: v7x
topology: tpu7x:2x2x1
jax: 0.10.0
libtpu: 0.0.40
codegen_flags: <defaults>
</compile_context>

<pallas_src>
import jax
import jax.numpy as jnp
from jax import lax
from jax.experimental import pallas as pl
from jax.experimental.pallas import tpu as pltpu

LN_EPS = 1e-5                 # PyTorch nn.LayerNorm default
GELU_APPROXIMATE = True       # tanh GELU -> EUP slot; False -> torch exact erf


def _gelu(x):
    if GELU_APPROXIMATE:
        c = jnp.float32(0.7978845608028654)   # sqrt(2/pi)
        return 0.5 * x * (1.0 + jnp.tanh(c * (x + 0.044715 * (x * x * x))))
    inv_sqrt2 = jnp.float32(0.7071067811865476)
    return 0.5 * x * (1.0 + lax.erf(x * inv_sqrt2))


def _layernorm(x, w, b):
    # x: (..., C); w, b broadcastable to x. Matches torch LayerNorm(hidden_dim).
    mu = jnp.mean(x, axis=-1, keepdims=True)
    var = jnp.mean(jnp.square(x - mu), axis=-1, keepdims=True)
    return (x - mu) * lax.rsqrt(var + LN_EPS) * w + b


# ------------------------------ fused kernel -------------------------------

def _mixer_net_kernel(patches_ref, pe_w, pe_b,
                      ln1w, ln1b, tw1, tb1, tw2, tb2,
                      ln2w, ln2b, cw1, cb1, cw2, cb2,
                      lnw, lnb, hw, hb,
                      o_ref):
    f32, bf16 = jnp.float32, jnp.bfloat16
    B, P, K = patches_ref.shape          # batch block, patches, flattened patch
    C = pe_w.shape[1]                    # hidden_dim
    T = tw1.shape[1]                     # tokens_mlp_dim
    n_blocks = tw1.shape[0]
    BP = B * P

    # --- patch embedding: batch folded into M -> (B*P, K) @ (K, C) on MXU ---
    p2 = patches_ref[...].reshape(BP, K)                                   # bf16
    x = jnp.dot(p2, pe_w[...], preferred_element_type=f32) + pe_b[...]     # (BP, C) f32

    # --- Mixer blocks (Python unroll; small fixed depth).
    # TODO(synk): for deep configs (>~4 blocks) switch to lax.fori_loop over
    # the stacked layer axis (dynamic ref[l] indexing) to bound live ranges.
    for l in range(n_blocks):
        # token mixing: shared (T,P)/(P,T) weight broadcast over the batch
        # block -> batched MXU matmuls, hidden_dim stays on lanes, zero
        # activation transposes.
        y = _layernorm(x, ln1w[l], ln1b[l]).astype(bf16).reshape(B, P, C)
        w1 = jnp.broadcast_to(tw1[l], (B, T, P))
        h = jnp.einsum('btp,bpc->btc', w1, y,
                       preferred_element_type=f32) + tb1[l]                # (B, T, C)
        g = _gelu(h).astype(bf16)
        w2 = jnp.broadcast_to(tw2[l], (B, P, T))
        r = jnp.einsum('bpt,btc->bpc', w2, g,
                       preferred_element_type=f32) + tb2[l]                # (B, P, C)
        x = x + r.reshape(BP, C)                                           # residual

        # channel mixing: batch folded into M -> (B*P, C) @ (C, Cm) etc.
        y = _layernorm(x, ln2w[l], ln2b[l]).astype(bf16)                   # (BP, C)
        h = jnp.dot(y, cw1[l], preferred_element_type=f32) + cb1[l]        # (BP, Cm)
        g = _gelu(h).astype(bf16)
        x = x + jnp.dot(g, cw2[l], preferred_element_type=f32) + cb2[l]    # (BP, C)

    # --- head: final LayerNorm, mean pool over patches, linear classifier ---
    y = _layernorm(x, lnw[...], lnb[...]).reshape(B, P, C)
    pooled = jnp.mean(y, axis=1).astype(bf16)                              # (B, C)
    logits = jnp.dot(pooled, hw[...], preferred_element_type=f32) + hb[...]
    o_ref[0] = logits.astype(o_ref.dtype)                                  # (B, nc)


# ------------------------------- full model --------------------------------

def _pick_batch_block(n, p, target_rows=256, max_rows=2048):
    """Samples per grid step: fill >= target_rows MXU rows, cap working set."""
    b = -(-target_rows // p)                       # ceil(target_rows / p)
    b = max(1, min(b, max(1, max_rows // p)))
    return min(b, n)


def mlp_mixer_forward(x, params, patch_size, batch_block=None):
    """x: [N, 3, H, W] float32 -> logits [N, n_classes]."""
    (pe_w, pe_b,
     ln1w, ln1b, tw1, tb1, tw2, tb2,
     ln2w, ln2b, cw1, cb1, cw2, cb2,
     lnw, lnb, hw, hb) = params

    N, Cin, H, W = x.shape
    ps = patch_size
    Hp, Wp = H // ps, W // ps
    P = Hp * Wp
    K = Cin * ps * ps
    nc = hw.shape[1]

    # im2col glue (layout-only XLA): Conv2d(k=p, s=p) == matmul over flattened
    # non-overlapping patches; cast to bf16 here so the kernel input DMA moves
    # half the bytes and the MXU sees bf16 directly.
    patches = x.reshape(N, Cin, Hp, ps, Wp, ps).transpose(0, 2, 4, 1, 3, 5)
    patches = patches.reshape(N, P, K).astype(jnp.bfloat16)

    if batch_block is None:
        batch_block = _pick_batch_block(N, P)
    steps = -(-N // batch_block)
    n_pad = steps * batch_block
    if n_pad != N:
        patches = jnp.pad(patches, ((0, n_pad - N), (0, 0), (0, 0)))

    # Matmul weights feed the MXU in bf16 (no-op when already pre-cast at
    # parameter-init time); biases / LN params stay f32.
    b16 = lambda a: a if a.dtype == jnp.bfloat16 else a.astype(jnp.bfloat16)
    weights = (b16(pe_w), pe_b,
               ln1w, ln1b, b16(tw1), tb1, b16(tw2), tb2,
               ln2w, ln2b, b16(cw1), cb1, b16(cw2), cb2,
               lnw, lnb, b16(hw), hb)

    def full_spec(a):
        # Whole weight resident in VMEM; constant index_map across grid steps.
        return pl.BlockSpec(a.shape, lambda n, _nd=a.ndim: (0,) * _nd)

    in_specs = ([pl.BlockSpec((batch_block, P, K), lambda n: (n, 0, 0))]
                + [full_spec(a) for a in weights])

    out = pl.pallas_call(
        _mixer_net_kernel,
        out_shape=jax.ShapeDtypeStruct((steps, batch_block, nc), x.dtype),
        grid=(steps,),
        in_specs=in_specs,
        out_specs=pl.BlockSpec((1, batch_block, nc), lambda n: (n, 0, 0)),
        compiler_params=pltpu.CompilerParams(
            dimension_semantics=("parallel",),
            # Explicit VMEM budget: above the 16 MiB v5e scoped default, well
            # inside v7x's 64 MiB physical VMEM.
            vmem_limit_bytes=32 * 1024 * 1024),
    )(patches, *weights)
    return out.reshape(n_pad, nc)[:N]


if __name__ == "__main__":
    # Small, deterministic configuration consistent with the module.
    img_size, patch_size = 16, 4
    hidden_dim, tokens_mlp_dim, channels_mlp_dim = 32, 16, 32
    n_classes, n_blocks, batch = 10, 2, 2
    n_patches = (img_size // patch_size) ** 2            # 16
    K = 3 * patch_size * patch_size                      # 48

    keys = iter(jax.random.split(jax.random.PRNGKey(0), 64))

    def init(shape, scale=0.05):
        return scale * jax.random.normal(next(keys), shape, dtype=jnp.float32)

    b16 = lambda a: a.astype(jnp.bfloat16)   # pre-cast matmul weights once

    # Patch embedder: Conv2d(3, hidden, k=p, s=p) -> weight (K, hidden), bias (1, hidden)
    pe_w = b16(init((K, hidden_dim)))
    pe_b = init((1, hidden_dim))

    # Per-block weights stacked along a leading "layer" axis.  Token-mix
    # weights kept in PyTorch (out, in) layout; biases shaped for in-kernel
    # broadcasting without reshapes.
    ln1w = jnp.ones((n_blocks, 1, hidden_dim), jnp.float32)
    ln1b = jnp.zeros((n_blocks, 1, hidden_dim), jnp.float32)
    tw1 = b16(init((n_blocks, tokens_mlp_dim, n_patches)))     # Linear(P->T) weight (T, P)
    tb1 = init((n_blocks, tokens_mlp_dim, 1))
    tw2 = b16(init((n_blocks, n_patches, tokens_mlp_dim)))     # Linear(T->P) weight (P, T)
    tb2 = init((n_blocks, n_patches, 1))
    ln2w = jnp.ones((n_blocks, 1, hidden_dim), jnp.float32)
    ln2b = jnp.zeros((n_blocks, 1, hidden_dim), jnp.float32)
    cw1 = b16(init((n_blocks, hidden_dim, channels_mlp_dim)))  # Linear(C->Cm) weight.T
    cb1 = init((n_blocks, 1, channels_mlp_dim))
    cw2 = b16(init((n_blocks, channels_mlp_dim, hidden_dim)))  # Linear(Cm->C) weight.T
    cb2 = init((n_blocks, 1, hidden_dim))

    lnw = jnp.ones((1, hidden_dim), jnp.float32)
    lnb = jnp.zeros((1, hidden_dim), jnp.float32)
    hw = b16(init((hidden_dim, n_classes)))
    hb = init((1, n_classes))

    params = (pe_w, pe_b,
              ln1w, ln1b, tw1, tb1, tw2, tb2,
              ln2w, ln2b, cw1, cb1, cw2, cb2,
              lnw, lnb, hw, hb)

    x = jax.random.normal(next(keys), (batch, 3, img_size, img_size), jnp.float32)

    forward = jax.jit(lambda xb, pp: mlp_mixer_forward(xb, pp, patch_size))
    logits = jax.block_until_ready(forward(x, params))
    assert logits.shape == (batch, n_classes)
    assert bool(jnp.all(jnp.isfinite(logits)))
    print("KERNEL_OK")
</pallas_src>

<mosaic_0001>
module attributes {stable_mosaic.version = 11 : i64} {
  func.func @_mixer_net_kernel(%arg0: i32, %arg1: memref<2x16x48xbf16, #tpu.memory_space<vmem>>, %arg2: memref<48x32xbf16, #tpu.memory_space<vmem>>, %arg3: memref<1x32xf32, #tpu.memory_space<vmem>>, %arg4: memref<2x1x32xf32, #tpu.memory_space<vmem>>, %arg5: memref<2x1x32xf32, #tpu.memory_space<vmem>>, %arg6: memref<2x16x16xbf16, #tpu.memory_space<vmem>>, %arg7: memref<2x16x1xf32, #tpu.memory_space<vmem>>, %arg8: memref<2x16x16xbf16, #tpu.memory_space<vmem>>, %arg9: memref<2x16x1xf32, #tpu.memory_space<vmem>>, %arg10: memref<2x1x32xf32, #tpu.memory_space<vmem>>, %arg11: memref<2x1x32xf32, #tpu.memory_space<vmem>>, %arg12: memref<2x32x32xbf16, #tpu.memory_space<vmem>>, %arg13: memref<2x1x32xf32, #tpu.memory_space<vmem>>, %arg14: memref<2x32x32xbf16, #tpu.memory_space<vmem>>, %arg15: memref<2x1x32xf32, #tpu.memory_space<vmem>>, %arg16: memref<1x32xf32, #tpu.memory_space<vmem>>, %arg17: memref<1x32xf32, #tpu.memory_space<vmem>>, %arg18: memref<32x10xbf16, #tpu.memory_space<vmem>>, %arg19: memref<1x10xf32, #tpu.memory_space<vmem>>, %arg20: memref<1x2x10xf32, #tpu.memory_space<vmem>>) attributes {dimension_semantics = [#tpu.dimension_semantics<parallel>], iteration_bounds = array<i64: 1>, scalar_prefetch = 0 : i64, scratch_operands = 0 : i64, tpu.core_type = #tpu.core_type<tc>, window_params = [{transform_indices = @transform_0, window_bounds = array<i64: 2, 16, 48>}, {pipeline_mode = #tpu.pipeline_mode<synchronous>, transform_indices = @transform_1, window_bounds = array<i64: 48, 32>}, {pipeline_mode = #tpu.pipeline_mode<synchronous>, transform_indices = @transform_2, window_bounds = array<i64: 1, 32>}, {pipeline_mode = #tpu.pipeline_mode<synchronous>, transform_indices = @transform_3, window_bounds = array<i64: 2, 1, 32>}, {pipeline_mode = #tpu.pipeline_mode<synchronous>, transform_indices = @transform_4, window_bounds = array<i64: 2, 1, 32>}, {pipeline_mode = #tpu.pipeline_mode<synchronous>, transform_indices = @transform_5, window_bounds = array<i64: 2, 16, 16>}, {pipeline_mode = #tpu.pipeline_mode<synchronous>, transform_indices = @transform_6, window_bounds = array<i64: 2, 16, 1>}, {pipeline_mode = #tpu.pipeline_mode<synchronous>, transform_indices = @transform_7, window_bounds = array<i64: 2, 16, 16>}, {pipeline_mode = #tpu.pipeline_mode<synchronous>, transform_indices = @transform_8, window_bounds = array<i64: 2, 16, 1>}, {pipeline_mode = #tpu.pipeline_mode<synchronous>, transform_indices = @transform_9, window_bounds = array<i64: 2, 1, 32>}, {pipeline_mode = #tpu.pipeline_mode<synchronous>, transform_indices = @transform_10, window_bounds = array<i64: 2, 1, 32>}, {pipeline_mode = #tpu.pipeline_mode<synchronous>, transform_indices = @transform_11, window_bounds = array<i64: 2, 32, 32>}, {pipeline_mode = #tpu.pipeline_mode<synchronous>, transform_indices = @transform_12, window_bounds = array<i64: 2, 1, 32>}, {pipeline_mode = #tpu.pipeline_mode<synchronous>, transform_indices = @transform_13, window_bounds = array<i64: 2, 32, 32>}, {pipeline_mode = #tpu.pipeline_mode<synchronous>, transform_indices = @transform_14, window_bounds = array<i64: 2, 1, 32>}, {pipeline_mode = #tpu.pipeline_mode<synchronous>, transform_indices = @transform_15, window_bounds = array<i64: 1, 32>}, {pipeline_mode = #tpu.pipeline_mode<synchronous>, transform_indices = @transform_16, window_bounds = array<i64: 1, 32>}, {pipeline_mode = #tpu.pipeline_mode<synchronous>, transform_indices = @transform_17, window_bounds = array<i64: 32, 10>}, {pipeline_mode = #tpu.pipeline_mode<synchronous>, transform_indices = @transform_18, window_bounds = array<i64: 1, 10>}, {transform_indices = @transform_19, window_bounds = array<i64: 1, 2, 10>}]} {
    %c0 = arith.constant 0 : index
    %c0_0 = arith.constant 0 : index
    %c0_1 = arith.constant 0 : index
    %0 = vector.load %arg1[%c0, %c0_0, %c0_1] : memref<2x16x48xbf16, #tpu.memory_space<vmem>>, vector<2x16x48xbf16>
    %1 = vector.shape_cast %0 : vector<2x16x48xbf16> to vector<32x48xbf16>
    %c0_2 = arith.constant 0 : index
    %c0_3 = arith.constant 0 : index
    %2 = vector.load %arg2[%c0_2, %c0_3] : memref<48x32xbf16, #tpu.memory_space<vmem>>, vector<48x32xbf16>
    %cst = arith.constant dense<0.000000e+00> : vector<32x32xf32>
    %3 = tpu.matmul %1, %2, %cst {dimension_numbers = #tpu.dot_dimension_numbers<[1], [0], [0], [1], [0, 0, 1, 1], [], []>} : vector<32x48xbf16>, vector<48x32xbf16>, vector<32x32xf32> -> vector<32x32xf32>
    %c0_4 = arith.constant 0 : index
    %c0_5 = arith.constant 0 : index
    %4 = vector.load %arg3[%c0_4, %c0_5] : memref<1x32xf32, #tpu.memory_space<vmem>>, vector<1x32xf32>
    %5 = vector.broadcast %4 : vector<1x32xf32> to vector<32x32xf32>
    %6 = arith.addf %3, %5 : vector<32x32xf32>
    %c0_6 = arith.constant 0 : index
    %c0_7 = arith.constant 0 : index
    %c0_8 = arith.constant 0 : index
    %7 = vector.load %arg4[%c0_6, %c0_7, %c0_8] : memref<2x1x32xf32, #tpu.memory_space<vmem>>, vector<1x1x32xf32>
    %8 = vector.shape_cast %7 : vector<1x1x32xf32> to vector<1x32xf32>
    %c0_9 = arith.constant 0 : index
    %c0_10 = arith.constant 0 : index
    %c0_11 = arith.constant 0 : index
    %9 = vector.load %arg5[%c0_9, %c0_10, %c0_11] : memref<2x1x32xf32, #tpu.memory_space<vmem>>, vector<1x1x32xf32>
    %10 = vector.shape_cast %9 : vector<1x1x32xf32> to vector<1x32xf32>
    %cst_12 = arith.constant dense<0.000000e+00> : vector<32xf32>
    %11 = vector.multi_reduction <add>, %6, %cst_12 [1] : vector<32x32xf32> to vector<32xf32>
    %12 = vector.shape_cast %11 : vector<32xf32> to vector<32x1xf32>
    %cst_13 = arith.constant 3.200000e+01 : f32
    %13 = vector.broadcast %cst_13 : f32 to vector<32x1xf32>
    %14 = arith.divf %12, %13 : vector<32x1xf32>
    %15 = vector.broadcast %14 : vector<32x1xf32> to vector<32x32xf32>
    %16 = arith.subf %6, %15 : vector<32x32xf32>
    %17 = arith.mulf %16, %16 : vector<32x32xf32>
    %cst_14 = arith.constant dense<0.000000e+00> : vector<32xf32>
    %18 = vector.multi_reduction <add>, %17, %cst_14 [1] : vector<32x32xf32> to vector<32xf32>
    %19 = vector.shape_cast %18 : vector<32xf32> to vector<32x1xf32>
    %cst_15 = arith.constant 3.200000e+01 : f32
    %20 = vector.broadcast %cst_15 : f32 to vector<32x1xf32>
    %21 = arith.divf %19, %20 : vector<32x1xf32>
    %22 = vector.broadcast %14 : vector<32x1xf32> to vector<32x32xf32>
    %23 = arith.subf %6, %22 : vector<32x32xf32>
    %cst_16 = arith.constant 9.99999974E-6 : f32
    %24 = vector.broadcast %cst_16 : f32 to vector<32x1xf32>
    %25 = arith.addf %21, %24 : vector<32x1xf32>
    %26 = math.rsqrt %25 : vector<32x1xf32>
    %27 = vector.broadcast %26 : vector<32x1xf32> to vector<32x32xf32>
    %28 = arith.mulf %23, %27 : vector<32x32xf32>
    %29 = vector.broadcast %8 : vector<1x32xf32> to vector<32x32xf32>
    %30 = arith.mulf %28, %29 : vector<32x32xf32>
    %31 = vector.broadcast %10 : vector<1x32xf32> to vector<32x32xf32>
    %32 = arith.addf %30, %31 : vector<32x32xf32>
    %33 = arith.truncf %32 : vector<32x32xf32> to vector<32x32xbf16>
    %34 = vector.shape_cast %33 : vector<32x32xbf16> to vector<2x16x32xbf16>
    %c0_17 = arith.constant 0 : index
    %c0_18 = arith.constant 0 : index
    %c0_19 = arith.constant 0 : index
    %35 = vector.load %arg6[%c0_17, %c0_18, %c0_19] : memref<2x16x16xbf16, #tpu.memory_space<vmem>>, vector<1x16x16xbf16>
    %36 = vector.shape_cast %35 : vector<1x16x16xbf16> to vector<16x16xbf16>
    %37 = vector.shape_cast %36 : vector<16x16xbf16> to vector<1x16x16xbf16>
    %38 = vector.broadcast %37 : vector<1x16x16xbf16> to vector<2x16x16xbf16>
    "tpu.trace_start"() <{level = 10 : i32, message = "btp,bpc->btc"}> : () -> ()
    %cst_20 = arith.constant dense<0.000000e+00> : vector<2x16x32xf32>
    %39 = tpu.matmul %38, %34, %cst_20 {dimension_numbers = #tpu.dot_dimension_numbers<[2], [1], [1], [2], [0, 0, 0, 1, 1, 2], [0], [0]>} : vector<2x16x16xbf16>, vector<2x16x32xbf16>, vector<2x16x32xf32> -> vector<2x16x32xf32>
    "tpu.trace_stop"() : () -> ()
    %c0_21 = arith.constant 0 : index
    %c0_22 = arith.constant 0 : index
    %c0_23 = arith.constant 0 : index
    %40 = vector.load %arg7[%c0_21, %c0_22, %c0_23] : memref<2x16x1xf32, #tpu.memory_space<vmem>>, vector<1x16x1xf32>
    %41 = vector.shape_cast %40 : vector<1x16x1xf32> to vector<16x1xf32>
    %42 = vector.shape_cast %41 : vector<16x1xf32> to vector<1x16x1xf32>
    %43 = vector.broadcast %42 : vector<1x16x1xf32> to vector<2x16x32xf32>
    %44 = arith.addf %39, %43 : vector<2x16x32xf32>
    %cst_24 = arith.constant 5.000000e-01 : f32
    %45 = vector.broadcast %cst_24 : f32 to vector<2x16x32xf32>
    %46 = arith.mulf %45, %44 : vector<2x16x32xf32>
    %47 = arith.mulf %44, %44 : vector<2x16x32xf32>
    %48 = arith.mulf %47, %44 : vector<2x16x32xf32>
    %cst_25 = arith.constant 4.471500e-02 : f32
    %49 = vector.broadcast %cst_25 : f32 to vector<2x16x32xf32>
    %50 = arith.mulf %49, %48 : vector<2x16x32xf32>
    %51 = arith.addf %44, %50 : vector<2x16x32xf32>
    %cst_26 = arith.constant 0.797884583 : f32
    %52 = vector.broadcast %cst_26 : f32 to vector<2x16x32xf32>
    %53 = arith.mulf %52, %51 : vector<2x16x32xf32>
    %54 = math.tanh %53 : vector<2x16x32xf32>
    %cst_27 = arith.constant 1.000000e+00 : f32
    %55 = vector.broadcast %cst_27 : f32 to vector<2x16x32xf32>
    %56 = arith.addf %55, %54 : vector<2x16x32xf32>
    %57 = arith.mulf %46, %56 : vector<2x16x32xf32>
    %58 = arith.truncf %57 : vector<2x16x32xf32> to vector<2x16x32xbf16>
    %c0_28 = arith.constant 0 : index
    %c0_29 = arith.constant 0 : index
    %c0_30 = arith.constant 0 : index
    %59 = vector.load %arg8[%c0_28, %c0_29, %c0_30] : memref<2x16x16xbf16, #tpu.memory_space<vmem>>, vector<1x16x16xbf16>
    %60 = vector.shape_cast %59 : vector<1x16x16xbf16> to vector<16x16xbf16>
    %61 = vector.shape_cast %60 : vector<16x16xbf16> to vector<1x16x16xbf16>
    %62 = vector.broadcast %61 : vector<1x16x16xbf16> to vector<2x16x16xbf16>
    "tpu.trace_start"() <{level = 10 : i32, message = "bpt,btc->bpc"}> : () -> ()
    %cst_31 = arith.constant dense<0.000000e+00> : vector<2x16x32xf32>
    %63 = tpu.matmul %62, %58, %cst_31 {dimension_numbers = #tpu.dot_dimension_numbers<[2], [1], [1], [2], [0, 0, 0, 1, 1, 2], [0], [0]>} : vector<2x16x16xbf16>, vector<2x16x32xbf16>, vector<2x16x32xf32> -> vector<2x16x32xf32>
    "tpu.trace_stop"() : () -> ()
    %c0_32 = arith.constant 0 : index
    %c0_33 = arith.constant 0 : index
    %c0_34 = arith.constant 0 : index
    %64 = vector.load %arg9[%c0_32, %c0_33, %c0_34] : memref<2x16x1xf32, #tpu.memory_space<vmem>>, vector<1x16x1xf32>
    %65 = vector.shape_cast %64 : vector<1x16x1xf32> to vector<16x1xf32>
    %66 = vector.shape_cast %65 : vector<16x1xf32> to vector<1x16x1xf32>
    %67 = vector.broadcast %66 : vector<1x16x1xf32> to vector<2x16x32xf32>
    %68 = arith.addf %63, %67 : vector<2x16x32xf32>
    %69 = vector.shape_cast %68 : vector<2x16x32xf32> to vector<32x32xf32>
    %70 = arith.addf %6, %69 : vector<32x32xf32>
    %c0_35 = arith.constant 0 : index
    %c0_36 = arith.constant 0 : index
    %c0_37 = arith.constant 0 : index
    %71 = vector.load %arg10[%c0_35, %c0_36, %c0_37] : memref<2x1x32xf32, #tpu.memory_space<vmem>>, vector<1x1x32xf32>
    %72 = vector.shape_cast %71 : vector<1x1x32xf32> to vector<1x32xf32>
    %c0_38 = arith.constant 0 : index
    %c0_39 = arith.constant 0 : index
    %c0_40 = arith.constant 0 : index
    %73 = vector.load %arg11[%c0_38, %c0_39, %c0_40] : memref<2x1x32xf32, #tpu.memory_space<vmem>>, vector<1x1x32xf32>
    %74 = vector.shape_cast %73 : vector<1x1x32xf32> to vector<1x32xf32>
    %cst_41 = arith.constant dense<0.000000e+00> : vector<32xf32>
    %75 = vector.multi_reduction <add>, %70, %cst_41 [1] : vector<32x32xf32> to vector<32xf32>
    %76 = vector.shape_cast %75 : vector<32xf32> to vector<32x1xf32>
    %cst_42 = arith.constant 3.200000e+01 : f32
    %77 = vector.broadcast %cst_42 : f32 to vector<32x1xf32>
    %78 = arith.divf %76, %77 : vector<32x1xf32>
    %79 = vector.broadcast %78 : vector<32x1xf32> to vector<32x32xf32>
    %80 = arith.subf %70, %79 : vector<32x32xf32>
    %81 = arith.mulf %80, %80 : vector<32x32xf32>
    %cst_43 = arith.constant dense<0.000000e+00> : vector<32xf32>
    %82 = vector.multi_reduction <add>, %81, %cst_43 [1] : vector<32x32xf32> to vector<32xf32>
    %83 = vector.shape_cast %82 : vector<32xf32> to vector<32x1xf32>
    %cst_44 = arith.constant 3.200000e+01 : f32
    %84 = vector.broadcast %cst_44 : f32 to vector<32x1xf32>
    %85 = arith.divf %83, %84 : vector<32x1xf32>
    %86 = vector.broadcast %78 : vector<32x1xf32> to vector<32x32xf32>
    %87 = arith.subf %70, %86 : vector<32x32xf32>
    %cst_45 = arith.constant 9.99999974E-6 : f32
    %88 = vector.broadcast %cst_45 : f32 to vector<32x1xf32>
    %89 = arith.addf %85, %88 : vector<32x1xf32>
    %90 = math.rsqrt %89 : vector<32x1xf32>
    %91 = vector.broadcast %90 : vector<32x1xf32> to vector<32x32xf32>
    %92 = arith.mulf %87, %91 : vector<32x32xf32>
    %93 = vector.broadcast %72 : vector<1x32xf32> to vector<32x32xf32>
    %94 = arith.mulf %92, %93 : vector<32x32xf32>
    %95 = vector.broadcast %74 : vector<1x32xf32> to vector<32x32xf32>
    %96 = arith.addf %94, %95 : vector<32x32xf32>
    %97 = arith.truncf %96 : vector<32x32xf32> to vector<32x32xbf16>
    %c0_46 = arith.constant 0 : index
    %c0_47 = arith.constant 0 : index
    %c0_48 = arith.constant 0 : index
    %98 = vector.load %arg12[%c0_46, %c0_47, %c0_48] : memref<2x32x32xbf16, #tpu.memory_space<vmem>>, vector<1x32x32xbf16>
    %99 = vector.shape_cast %98 : vector<1x32x32xbf16> to vector<32x32xbf16>
    %cst_49 = arith.constant dense<0.000000e+00> : vector<32x32xf32>
    %100 = tpu.matmul %97, %99, %cst_49 {dimension_numbers = #tpu.dot_dimension_numbers<[1], [0], [0], [1], [0, 0, 1, 1], [], []>} : vector<32x32xbf16>, vector<32x32xbf16>, vector<32x32xf32> -> vector<32x32xf32>
    %c0_50 = arith.constant 0 : index
    %c0_51 = arith.constant 0 : index
    %c0_52 = arith.constant 0 : index
    %101 = vector.load %arg13[%c0_50, %c0_51, %c0_52] : memref<2x1x32xf32, #tpu.memory_space<vmem>>, vector<1x1x32xf32>
    %102 = vector.shape_cast %101 : vector<1x1x32xf32> to vector<1x32xf32>
    %103 = vector.broadcast %102 : vector<1x32xf32> to vector<32x32xf32>
    %104 = arith.addf %100, %103 : vector<32x32xf32>
    %cst_53 = arith.constant 5.000000e-01 : f32
    %105 = vector.broadcast %cst_53 : f32 to vector<32x32xf32>
    %106 = arith.mulf %105, %104 : vector<32x32xf32>
    %107 = arith.mulf %104, %104 : vector<32x32xf32>
    %108 = arith.mulf %107, %104 : vector<32x32xf32>
    %cst_54 = arith.constant 4.471500e-02 : f32
    %109 = vector.broadcast %cst_54 : f32 to vector<32x32xf32>
    %110 = arith.mulf %109, %108 : vector<32x32xf32>
    %111 = arith.addf %104, %110 : vector<32x32xf32>
    %cst_55 = arith.constant 0.797884583 : f32
    %112 = vector.broadcast %cst_55 : f32 to vector<32x32xf32>
    %113 = arith.mulf %112, %111 : vector<32x32xf32>
    %114 = math.tanh %113 : vector<32x32xf32>
    %cst_56 = arith.constant 1.000000e+00 : f32
    %115 = vector.broadcast %cst_56 : f32 to vector<32x32xf32>
    %116 = arith.addf %115, %114 : vector<32x32xf32>
    %117 = arith.mulf %106, %116 : vector<32x32xf32>
    %118 = arith.truncf %117 : vector<32x32xf32> to vector<32x32xbf16>
    %c0_57 = arith.constant 0 : index
    %c0_58 = arith.constant 0 : index
    %c0_59 = arith.constant 0 : index
    %119 = vector.load %arg14[%c0_57, %c0_58, %c0_59] : memref<2x32x32xbf16, #tpu.memory_space<vmem>>, vector<1x32x32xbf16>
    %120 = vector.shape_cast %119 : vector<1x32x32xbf16> to vector<32x32xbf16>
    %cst_60 = arith.constant dense<0.000000e+00> : vector<32x32xf32>
    %121 = tpu.matmul %118, %120, %cst_60 {dimension_numbers = #tpu.dot_dimension_numbers<[1], [0], [0], [1], [0, 0, 1, 1], [], []>} : vector<32x32xbf16>, vector<32x32xbf16>, vector<32x32xf32> -> vector<32x32xf32>
    %122 = arith.addf %70, %121 : vector<32x32xf32>
    %c0_61 = arith.constant 0 : index
    %c0_62 = arith.constant 0 : index
    %c0_63 = arith.constant 0 : index
    %123 = vector.load %arg15[%c0_61, %c0_62, %c0_63] : memref<2x1x32xf32, #tpu.memory_space<vmem>>, vector<1x1x32xf32>
    %124 = vector.shape_cast %123 : vector<1x1x32xf32> to vector<1x32xf32>
    %125 = vector.broadcast %124 : vector<1x32xf32> to vector<32x32xf32>
    %126 = arith.addf %122, %125 : vector<32x32xf32>
    %c1 = arith.constant 1 : index
    %c0_64 = arith.constant 0 : index
    %c0_65 = arith.constant 0 : index
    %127 = vector.load %arg4[%c1, %c0_64, %c0_65] : memref<2x1x32xf32, #tpu.memory_space<vmem>>, vector<1x1x32xf32>
    %128 = vector.shape_cast %127 : vector<1x1x32xf32> to vector<1x32xf32>
    %c1_66 = arith.constant 1 : index
    %c0_67 = arith.constant 0 : index
    %c0_68 = arith.constant 0 : index
    %129 = vector.load %arg5[%c1_66, %c0_67, %c0_68] : memref<2x1x32xf32, #tpu.memory_space<vmem>>, vector<1x1x32xf32>
    %130 = vector.shape_cast %129 : vector<1x1x32xf32> to vector<1x32xf32>
    %cst_69 = arith.constant dense<0.000000e+00> : vector<32xf32>
    %131 = vector.multi_reduction <add>, %126, %cst_69 [1] : vector<32x32xf32> to vector<32xf32>
    %132 = vector.shape_cast %131 : vector<32xf32> to vector<32x1xf32>
    %cst_70 = arith.constant 3.200000e+01 : f32
    %133 = vector.broadcast %cst_70 : f32 to vector<32x1xf32>
    %134 = arith.divf %132, %133 : vector<32x1xf32>
    %135 = vector.broadcast %134 : vector<32x1xf32> to vector<32x32xf32>
    %136 = arith.subf %126, %135 : vector<32x32xf32>
    %137 = arith.mulf %136, %136 : vector<32x32xf32>
    %cst_71 = arith.constant dense<0.000000e+00> : vector<32xf32>
    %138 = vector.multi_reduction <add>, %137, %cst_71 [1] : vector<32x32xf32> to vector<32xf32>
    %139 = vector.shape_cast %138 : vector<32xf32> to vector<32x1xf32>
    %cst_72 = arith.constant 3.200000e+01 : f32
    %140 = vector.broadcast %cst_72 : f32 to vector<32x1xf32>
    %141 = arith.divf %139, %140 : vector<32x1xf32>
    %142 = vector.broadcast %134 : vector<32x1xf32> to vector<32x32xf32>
    %143 = arith.subf %126, %142 : vector<32x32xf32>
    %cst_73 = arith.constant 9.99999974E-6 : f32
    %144 = vector.broadcast %cst_73 : f32 to vector<32x1xf32>
    %145 = arith.addf %141, %144 : vector<32x1xf32>
    %146 = math.rsqrt %145 : vector<32x1xf32>
    %147 = vector.broadcast %146 : vector<32x1xf32> to vector<32x32xf32>
    %148 = arith.mulf %143, %147 : vector<32x32xf32>
    %149 = vector.broadcast %128 : vector<1x32xf32> to vector<32x32xf32>
    %150 = arith.mulf %148, %149 : vector<32x32xf32>
    %151 = vector.broadcast %130 : vector<1x32xf32> to vector<32x32xf32>
    %152 = arith.addf %150, %151 : vector<32x32xf32>
    %153 = arith.truncf %152 : vector<32x32xf32> to vector<32x32xbf16>
    %154 = vector.shape_cast %153 : vector<32x32xbf16> to vector<2x16x32xbf16>
    %c1_74 = arith.constant 1 : index
    %c0_75 = arith.constant 0 : index
    %c0_76 = arith.constant 0 : index
    %155 = vector.load %arg6[%c1_74, %c0_75, %c0_76] : memref<2x16x16xbf16, #tpu.memory_space<vmem>>, vector<1x16x16xbf16>
    %156 = vector.shape_cast %155 : vector<1x16x16xbf16> to vector<16x16xbf16>
    %157 = vector.shape_cast %156 : vector<16x16xbf16> to vector<1x16x16xbf16>
    %158 = vector.broadcast %157 : vector<1x16x16xbf16> to vector<2x16x16xbf16>
    "tpu.trace_start"() <{level = 10 : i32, message = "btp,bpc->btc"}> : () -> ()
    %cst_77 = arith.constant dense<0.000000e+00> : vector<2x16x32xf32>
    %159 = tpu.matmul %158, %154, %cst_77 {dimension_numbers = #tpu.dot_dimension_numbers<[2], [1], [1], [2], [0, 0, 0, 1, 1, 2], [0], [0]>} : vector<2x16x16xbf16>, vector<2x16x32xbf16>, vector<2x16x32xf32> -> vector<2x16x32xf32>
    "tpu.trace_stop"() : () -> ()
    %c1_78 = arith.constant 1 : index
    %c0_79 = arith.constant 0 : index
    %c0_80 = arith.constant 0 : index
    %160 = vector.load %arg7[%c1_78, %c0_79, %c0_80] : memref<2x16x1xf32, #tpu.memory_space<vmem>>, vector<1x16x1xf32>
    %161 = vector.shape_cast %160 : vector<1x16x1xf32> to vector<16x1xf32>
    %162 = vector.shape_cast %161 : vector<16x1xf32> to vector<1x16x1xf32>
    %163 = vector.broadcast %162 : vector<1x16x1xf32> to vector<2x16x32xf32>
    %164 = arith.addf %159, %163 : vector<2x16x32xf32>
    %cst_81 = arith.constant 5.000000e-01 : f32
    %165 = vector.broadcast %cst_81 : f32 to vector<2x16x32xf32>
    %166 = arith.mulf %165, %164 : vector<2x16x32xf32>
    %167 = arith.mulf %164, %164 : vector<2x16x32xf32>
    %168 = arith.mulf %167, %164 : vector<2x16x32xf32>
    %cst_82 = arith.constant 4.471500e-02 : f32
    %169 = vector.broadcast %cst_82 : f32 to vector<2x16x32xf32>
    %170 = arith.mulf %169, %168 : vector<2x16x32xf32>
    %171 = arith.addf %164, %170 : vector<2x16x32xf32>
    %cst_83 = arith.constant 0.797884583 : f32
    %172 = vector.broadcast %cst_83 : f32 to vector<2x16x32xf32>
    %173 = arith.mulf %172, %171 : vector<2x16x32xf32>
    %174 = math.tanh %173 : vector<2x16x32xf32>
    %cst_84 = arith.constant 1.000000e+00 : f32
    %175 = vector.broadcast %cst_84 : f32 to vector<2x16x32xf32>
    %176 = arith.addf %175, %174 : vector<2x16x32xf32>
    %177 = arith.mulf %166, %176 : vector<2x16x32xf32>
    %178 = arith.truncf %177 : vector<2x16x32xf32> to vector<2x16x32xbf16>
    %c1_85 = arith.constant 1 : index
    %c0_86 = arith.constant 0 : index
    %c0_87 = arith.constant 0 : index
    %179 = vector.load %arg8[%c1_85, %c0_86, %c0_87] : memref<2x16x16xbf16, #tpu.memory_space<vmem>>, vector<1x16x16xbf16>
    %180 = vector.shape_cast %179 : vector<1x16x16xbf16> to vector<16x16xbf16>
    %181 = vector.shape_cast %180 : vector<16x16xbf16> to vector<1x16x16xbf16>
    %182 = vector.broadcast %181 : vector<1x16x16xbf16> to vector<2x16x16xbf16>
    "tpu.trace_start"() <{level = 10 : i32, message = "bpt,btc->bpc"}> : () -> ()
    %cst_88 = arith.constant dense<0.000000e+00> : vector<2x16x32xf32>
    %183 = tpu.matmul %182, %178, %cst_88 {dimension_numbers = #tpu.dot_dimension_numbers<[2], [1], [1], [2], [0, 0, 0, 1, 1, 2], [0], [0]>} : vector<2x16x16xbf16>, vector<2x16x32xbf16>, vector<2x16x32xf32> -> vector<2x16x32xf32>
    "tpu.trace_stop"() : () -> ()
    %c1_89 = arith.constant 1 : index
    %c0_90 = arith.constant 0 : index
    %c0_91 = arith.constant 0 : index
    %184 = vector.load %arg9[%c1_89, %c0_90, %c0_91] : memref<2x16x1xf32, #tpu.memory_space<vmem>>, vector<1x16x1xf32>
    %185 = vector.shape_cast %184 : vector<1x16x1xf32> to vector<16x1xf32>
    %186 = vector.shape_cast %185 : vector<16x1xf32> to vector<1x16x1xf32>
    %187 = vector.broadcast %186 : vector<1x16x1xf32> to vector<2x16x32xf32>
    %188 = arith.addf %183, %187 : vector<2x16x32xf32>
    %189 = vector.shape_cast %188 : vector<2x16x32xf32> to vector<32x32xf32>
    %190 = arith.addf %126, %189 : vector<32x32xf32>
    %c1_92 = arith.constant 1 : index
    %c0_93 = arith.constant 0 : index
    %c0_94 = arith.constant 0 : index
    %191 = vector.load %arg10[%c1_92, %c0_93, %c0_94] : memref<2x1x32xf32, #tpu.memory_space<vmem>>, vector<1x1x32xf32>
    %192 = vector.shape_cast %191 : vector<1x1x32xf32> to vector<1x32xf32>
    %c1_95 = arith.constant 1 : index
    %c0_96 = arith.constant 0 : index
    %c0_97 = arith.constant 0 : index
    %193 = vector.load %arg11[%c1_95, %c0_96, %c0_97] : memref<2x1x32xf32, #tpu.memory_space<vmem>>, vector<1x1x32xf32>
    %194 = vector.shape_cast %193 : vector<1x1x32xf32> to vector<1x32xf32>
    %cst_98 = arith.constant dense<0.000000e+00> : vector<32xf32>
    %195 = vector.multi_reduction <add>, %190, %cst_98 [1] : vector<32x32xf32> to vector<32xf32>
    %196 = vector.shape_cast %195 : vector<32xf32> to vector<32x1xf32>
    %cst_99 = arith.constant 3.200000e+01 : f32
    %197 = vector.broadcast %cst_99 : f32 to vector<32x1xf32>
    %198 = arith.divf %196, %197 : vector<32x1xf32>
    %199 = vector.broadcast %198 : vector<32x1xf32> to vector<32x32xf32>
    %200 = arith.subf %190, %199 : vector<32x32xf32>
    %201 = arith.mulf %200, %200 : vector<32x32xf32>
    %cst_100 = arith.constant dense<0.000000e+00> : vector<32xf32>
    %202 = vector.multi_reduction <add>, %201, %cst_100 [1] : vector<32x32xf32> to vector<32xf32>
    %203 = vector.shape_cast %202 : vector<32xf32> to vector<32x1xf32>
    %cst_101 = arith.constant 3.200000e+01 : f32
    %204 = vector.broadcast %cst_101 : f32 to vector<32x1xf32>
    %205 = arith.divf %203, %204 : vector<32x1xf32>
    %206 = vector.broadcast %198 : vector<32x1xf32> to vector<32x32xf32>
    %207 = arith.subf %190, %206 : vector<32x32xf32>
    %cst_102 = arith.constant 9.99999974E-6 : f32
    %208 = vector.broadcast %cst_102 : f32 to vector<32x1xf32>
    %209 = arith.addf %205, %208 : vector<32x1xf32>
    %210 = math.rsqrt %209 : vector<32x1xf32>
    %211 = vector.broadcast %210 : vector<32x1xf32> to vector<32x32xf32>
    %212 = arith.mulf %207, %211 : vector<32x32xf32>
    %213 = vector.broadcast %192 : vector<1x32xf32> to vector<32x32xf32>
    %214 = arith.mulf %212, %213 : vector<32x32xf32>
    %215 = vector.broadcast %194 : vector<1x32xf32> to vector<32x32xf32>
    %216 = arith.addf %214, %215 : vector<32x32xf32>
    %217 = arith.truncf %216 : vector<32x32xf32> to vector<32x32xbf16>
    %c1_103 = arith.constant 1 : index
    %c0_104 = arith.constant 0 : index
    %c0_105 = arith.constant 0 : index
    %218 = vector.load %arg12[%c1_103, %c0_104, %c0_105] : memref<2x32x32xbf16, #tpu.memory_space<vmem>>, vector<1x32x32xbf16>
    %219 = vector.shape_cast %218 : vector<1x32x32xbf16> to vector<32x32xbf16>
    %cst_106 = arith.constant dense<0.000000e+00> : vector<32x32xf32>
    %220 = tpu.matmul %217, %219, %cst_106 {dimension_numbers = #tpu.dot_dimension_numbers<[1], [0], [0], [1], [0, 0, 1, 1], [], []>} : vector<32x32xbf16>, vector<32x32xbf16>, vector<32x32xf32> -> vector<32x32xf32>
    %c1_107 = arith.constant 1 : index
    %c0_108 = arith.constant 0 : index
    %c0_109 = arith.constant 0 : index
    %221 = vector.load %arg13[%c1_107, %c0_108, %c0_109] : memref<2x1x32xf32, #tpu.memory_space<vmem>>, vector<1x1x32xf32>
    %222 = vector.shape_cast %221 : vector<1x1x32xf32> to vector<1x32xf32>
    %223 = vector.broadcast %222 : vector<1x32xf32> to vector<32x32xf32>
    %224 = arith.addf %220, %223 : vector<32x32xf32>
    %cst_110 = arith.constant 5.000000e-01 : f32
    %225 = vector.broadcast %cst_110 : f32 to vector<32x32xf32>
    %226 = arith.mulf %225, %224 : vector<32x32xf32>
    %227 = arith.mulf %224, %224 : vector<32x32xf32>
    %228 = arith.mulf %227, %224 : vector<32x32xf32>
    %cst_111 = arith.constant 4.471500e-02 : f32
    %229 = vector.broadcast %cst_111 : f32 to vector<32x32xf32>
    %230 = arith.mulf %229, %228 : vector<32x32xf32>
    %231 = arith.addf %224, %230 : vector<32x32xf32>
    %cst_112 = arith.constant 0.797884583 : f32
    %232 = vector.broadcast %cst_112 : f32 to vector<32x32xf32>
    %233 = arith.mulf %232, %231 : vector<32x32xf32>
    %234 = math.tanh %233 : vector<32x32xf32>
    %cst_113 = arith.constant 1.000000e+00 : f32
    %235 = vector.broadcast %cst_113 : f32 to vector<32x32xf32>
    %236 = arith.addf %235, %234 : vector<32x32xf32>
    %237 = arith.mulf %226, %236 : vector<32x32xf32>
    %238 = arith.truncf %237 : vector<32x32xf32> to vector<32x32xbf16>
    %c1_114 = arith.constant 1 : index
    %c0_115 = arith.constant 0 : index
    %c0_116 = arith.constant 0 : index
    %239 = vector.load %arg14[%c1_114, %c0_115, %c0_116] : memref<2x32x32xbf16, #tpu.memory_space<vmem>>, vector<1x32x32xbf16>
    %240 = vector.shape_cast %239 : vector<1x32x32xbf16> to vector<32x32xbf16>
    %cst_117 = arith.constant dense<0.000000e+00> : vector<32x32xf32>
    %241 = tpu.matmul %238, %240, %cst_117 {dimension_numbers = #tpu.dot_dimension_numbers<[1], [0], [0], [1], [0, 0, 1, 1], [], []>} : vector<32x32xbf16>, vector<32x32xbf16>, vector<32x32xf32> -> vector<32x32xf32>
    %242 = arith.addf %190, %241 : vector<32x32xf32>
    %c1_118 = arith.constant 1 : index
    %c0_119 = arith.constant 0 : index
    %c0_120 = arith.constant 0 : index
    %243 = vector.load %arg15[%c1_118, %c0_119, %c0_120] : memref<2x1x32xf32, #tpu.memory_space<vmem>>, vector<1x1x32xf32>
    %244 = vector.shape_cast %243 : vector<1x1x32xf32> to vector<1x32xf32>
    %245 = vector.broadcast %244 : vector<1x32xf32> to vector<32x32xf32>
    %246 = arith.addf %242, %245 : vector<32x32xf32>
    %c0_121 = arith.constant 0 : index
    %c0_122 = arith.constant 0 : index
    %247 = vector.load %arg16[%c0_121, %c0_122] : memref<1x32xf32, #tpu.memory_space<vmem>>, vector<1x32xf32>
    %c0_123 = arith.constant 0 : index
    %c0_124 = arith.constant 0 : index
    %248 = vector.load %arg17[%c0_123, %c0_124] : memref<1x32xf32, #tpu.memory_space<vmem>>, vector<1x32xf32>
    %cst_125 = arith.constant dense<0.000000e+00> : vector<32xf32>
    %249 = vector.multi_reduction <add>, %246, %cst_125 [1] : vector<32x32xf32> to vector<32xf32>
    %250 = vector.shape_cast %249 : vector<32xf32> to vector<32x1xf32>
    %cst_126 = arith.constant 3.200000e+01 : f32
    %251 = vector.broadcast %cst_126 : f32 to vector<32x1xf32>
    %252 = arith.divf %250, %251 : vector<32x1xf32>
    %253 = vector.broadcast %252 : vector<32x1xf32> to vector<32x32xf32>
    %254 = arith.subf %246, %253 : vector<32x32xf32>
    %255 = arith.mulf %254, %254 : vector<32x32xf32>
    %cst_127 = arith.constant dense<0.000000e+00> : vector<32xf32>
    %256 = vector.multi_reduction <add>, %255, %cst_127 [1] : vector<32x32xf32> to vector<32xf32>
    %257 = vector.shape_cast %256 : vector<32xf32> to vector<32x1xf32>
    %cst_128 = arith.constant 3.200000e+01 : f32
    %258 = vector.broadcast %cst_128 : f32 to vector<32x1xf32>
    %259 = arith.divf %257, %258 : vector<32x1xf32>
    %260 = vector.broadcast %252 : vector<32x1xf32> to vector<32x32xf32>
    %261 = arith.subf %246, %260 : vector<32x32xf32>
    %cst_129 = arith.constant 9.99999974E-6 : f32
    %262 = vector.broadcast %cst_129 : f32 to vector<32x1xf32>
    %263 = arith.addf %259, %262 : vector<32x1xf32>
    %264 = math.rsqrt %263 : vector<32x1xf32>
    %265 = vector.broadcast %264 : vector<32x1xf32> to vector<32x32xf32>
    %266 = arith.mulf %261, %265 : vector<32x32xf32>
    %267 = vector.broadcast %247 : vector<1x32xf32> to vector<32x32xf32>
    %268 = arith.mulf %266, %267 : vector<32x32xf32>
    %269 = vector.broadcast %248 : vector<1x32xf32> to vector<32x32xf32>
    %270 = arith.addf %268, %269 : vector<32x32xf32>
    %271 = vector.shape_cast %270 : vector<32x32xf32> to vector<2x16x32xf32>
    %cst_130 = arith.constant dense<0.000000e+00> : vector<2x32xf32>
    %272 = vector.multi_reduction <add>, %271, %cst_130 [1] : vector<2x16x32xf32> to vector<2x32xf32>
    %cst_131 = arith.constant 1.600000e+01 : f32
    %273 = vector.broadcast %cst_131 : f32 to vector<2x32xf32>
    %274 = arith.divf %272, %273 : vector<2x32xf32>
    %275 = arith.truncf %274 : vector<2x32xf32> to vector<2x32xbf16>
    %c0_132 = arith.constant 0 : index
    %c0_133 = arith.constant 0 : index
    %276 = vector.load %arg18[%c0_132, %c0_133] : memref<32x10xbf16, #tpu.memory_space<vmem>>, vector<32x10xbf16>
    %cst_134 = arith.constant dense<0.000000e+00> : vector<2x10xf32>
    %277 = tpu.matmul %275, %276, %cst_134 {dimension_numbers = #tpu.dot_dimension_numbers<[1], [0], [0], [1], [0, 0, 1, 1], [], []>} : vector<2x32xbf16>, vector<32x10xbf16>, vector<2x10xf32> -> vector<2x10xf32>
    %c0_135 = arith.constant 0 : index
    %c0_136 = arith.constant 0 : index
    %278 = vector.load %arg19[%c0_135, %c0_136] : memref<1x10xf32, #tpu.memory_space<vmem>>, vector<1x10xf32>
    %279 = vector.broadcast %278 : vector<1x10xf32> to vector<2x10xf32>
    %280 = arith.addf %277, %279 : vector<2x10xf32>
    %c0_137 = arith.constant 0 : index
    %c0_138 = arith.constant 0 : index
    %c0_139 = arith.constant 0 : index
    %281 = vector.load %arg20[%c0_137, %c0_138, %c0_139] : memref<1x2x10xf32, #tpu.memory_space<vmem>>, vector<1x2x10xf32>
    %282 = vector.shape_cast %281 : vector<1x2x10xf32> to vector<2x10xf32>
    %283 = vector.shape_cast %280 : vector<2x10xf32> to vector<1x2x10xf32>
    tpu.vector_store %arg20[%c0_137, %c0_138, %c0_139], %283 {strides = array<i32>} : memref<1x2x10xf32, #tpu.memory_space<vmem>>, vector<1x2x10xf32>,
    return
  }
  func.func @transform_0(%arg0: i32) -> (i32, i32, i32) {
    %c0_i32 = arith.constant 0 : i32
    %c0_i32_0 = arith.constant 0 : i32
    %c0_i32_1 = arith.constant 0 : i32
    return %arg0, %c0_i32, %c0_i32_0 : i32, i32, i32
  }
  func.func @transform_1(%arg0: i32) -> (i32, i32) {
    %c0_i32 = arith.constant 0 : i32
    %c0_i32_0 = arith.constant 0 : i32
    %c0_i32_1 = arith.constant 0 : i32
    return %c0_i32, %c0_i32_0 : i32, i32
  }
  func.func @transform_2(%arg0: i32) -> (i32, i32) {
    %c0_i32 = arith.constant 0 : i32
    %c0_i32_0 = arith.constant 0 : i32
    %c0_i32_1 = arith.constant 0 : i32
    return %c0_i32, %c0_i32_0 : i32, i32
  }
  func.func @transform_3(%arg0: i32) -> (i32, i32, i32) {
    %c0_i32 = arith.constant 0 : i32
    %c0_i32_0 = arith.constant 0 : i32
    %c0_i32_1 = arith.constant 0 : i32
    %c0_i32_2 = arith.constant 0 : i32
    return %c0_i32, %c0_i32_0, %c0_i32_1 : i32, i32, i32
  }
  func.func @transform_4(%arg0: i32) -> (i32, i32, i32) {
    %c0_i32 = arith.constant 0 : i32
    %c0_i32_0 = arith.constant 0 : i32
    %c0_i32_1 = arith.constant 0 : i32
    %c0_i32_2 = arith.constant 0 : i32
    return %c0_i32, %c0_i32_0, %c0_i32_1 : i32, i32, i32
  }
  func.func @transform_5(%arg0: i32) -> (i32, i32, i32) {
    %c0_i32 = arith.constant 0 : i32
    %c0_i32_0 = arith.constant 0 : i32
    %c0_i32_1 = arith.constant 0 : i32
    %c0_i32_2 = arith.constant 0 : i32
    return %c0_i32, %c0_i32_0, %c0_i32_1 : i32, i32, i32
  }
  func.func @transform_6(%arg0: i32) -> (i32, i32, i32) {
    %c0_i32 = arith.constant 0 : i32
    %c0_i32_0 = arith.constant 0 : i32
    %c0_i32_1 = arith.constant 0 : i32
    %c0_i32_2 = arith.constant 0 : i32
    return %c0_i32, %c0_i32_0, %c0_i32_1 : i32, i32, i32
  }
  func.func @transform_7(%arg0: i32) -> (i32, i32, i32) {
    %c0_i32 = arith.constant 0 : i32
    %c0_i32_0 = arith.constant 0 : i32
    %c0_i32_1 = arith.constant 0 : i32
    %c0_i32_2 = arith.constant 0 : i32
    return %c0_i32, %c0_i32_0, %c0_i32_1 : i32, i32, i32
  }
  func.func @transform_8(%arg0: i32) -> (i32, i32, i32) {
    %c0_i32 = arith.constant 0 : i32
    %c0_i32_0 = arith.constant 0 : i32
    %c0_i32_1 = arith.constant 0 : i32
    %c0_i32_2 = arith.constant 0 : i32
    return %c0_i32, %c0_i32_0, %c0_i32_1 : i32, i32, i32
  }
  func.func @transform_9(%arg0: i32) -> (i32, i32, i32) {
    %c0_i32 = arith.constant 0 : i32
    %c0_i32_0 = arith.constant 0 : i32
    %c0_i32_1 = arith.constant 0 : i32
    %c0_i32_2 = arith.constant 0 : i32
    return %c0_i32, %c0_i32_0, %c0_i32_1 : i32, i32, i32
  }
  func.func @transform_10(%arg0: i32) -> (i32, i32, i32) {
    %c0_i32 = arith.constant 0 : i32
    %c0_i32_0 = arith.constant 0 : i32
    %c0_i32_1 = arith.constant 0 : i32
    %c0_i32_2 = arith.constant 0 : i32
    return %c0_i32, %c0_i32_0, %c0_i32_1 : i32, i32, i32
  }
  func.func @transform_11(%arg0: i32) -> (i32, i32, i32) {
    %c0_i32 = arith.constant 0 : i32
    %c0_i32_0 = arith.constant 0 : i32
    %c0_i32_1 = arith.constant 0 : i32
    %c0_i32_2 = arith.constant 0 : i32
    return %c0_i32, %c0_i32_0, %c0_i32_1 : i32, i32, i32
  }
  func.func @transform_12(%arg0: i32) -> (i32, i32, i32) {
    %c0_i32 = arith.constant 0 : i32
    %c0_i32_0 = arith.constant 0 : i32
    %c0_i32_1 = arith.constant 0 : i32
    %c0_i32_2 = arith.constant 0 : i32
    return %c0_i32, %c0_i32_0, %c0_i32_1 : i32, i32, i32
  }
  func.func @transform_13(%arg0: i32) -> (i32, i32, i32) {
    %c0_i32 = arith.constant 0 : i32
    %c0_i32_0 = arith.constant 0 : i32
    %c0_i32_1 = arith.constant 0 : i32
    %c0_i32_2 = arith.constant 0 : i32
    return %c0_i32, %c0_i32_0, %c0_i32_1 : i32, i32, i32
  }
  func.func @transform_14(%arg0: i32) -> (i32, i32, i32) {
    %c0_i32 = arith.constant 0 : i32
    %c0_i32_0 = arith.constant 0 : i32
    %c0_i32_1 = arith.constant 0 : i32
    %c0_i32_2 = arith.constant 0 : i32
    return %c0_i32, %c0_i32_0, %c0_i32_1 : i32, i32, i32
  }
  func.func @transform_15(%arg0: i32) -> (i32, i32) {
    %c0_i32 = arith.constant 0 : i32
    %c0_i32_0 = arith.constant 0 : i32
    %c0_i32_1 = arith.constant 0 : i32
    return %c0_i32, %c0_i32_0 : i32, i32
  }
  func.func @transform_16(%arg0: i32) -> (i32, i32) {
    %c0_i32 = arith.constant 0 : i32
    %c0_i32_0 = arith.constant 0 : i32
    %c0_i32_1 = arith.constant 0 : i32
    return %c0_i32, %c0_i32_0 : i32, i32
  }
  func.func @transform_17(%arg0: i32) -> (i32, i32) {
    %c0_i32 = arith.constant 0 : i32
    %c0_i32_0 = arith.constant 0 : i32
    %c0_i32_1 = arith.constant 0 : i32
    return %c0_i32, %c0_i32_0 : i32, i32
  }
  func.func @transform_18(%arg0: i32) -> (i32, i32) {
    %c0_i32 = arith.constant 0 : i32
    %c0_i32_0 = arith.constant 0 : i32
    %c0_i32_1 = arith.constant 0 : i32
    return %c0_i32, %c0_i32_0 : i32, i32
  }
  func.func @transform_19(%arg0: i32) -> (i32, i32, i32) {
    %c0_i32 = arith.constant 0 : i32
    %c0_i32_0 = arith.constant 0 : i32
    %c0_i32_1 = arith.constant 0 : i32
    return %arg0, %c0_i32, %c0_i32_0 : i32, i32, i32
  }
}

</mosaic_0001>

<bundles_post_ra>
// kernel: _lambda_.1
= control target key start
LH: loop header
LB: loop body
LE: loop exit
PB: predicated region body
PF: predicated region fallthrough
CT: control target
= control target key end

     0   :  { %s2323_s0 = inlined_call_operand.vmem [shape: bf16[2,16,48], index: 0, kind: input, shape index: {}]   ;;  %s2324_s1 = inlined_call_operand.vmem [shape: bf16[48,32], index: 1, kind: input, shape index: {}]   ;;  %s2325_s2 = inlined_call_operand.vmem [shape: f32[1,32], index: 2, kind: input, shape index: {}]   ;;  %s2326_s3 = inlined_call_operand.vmem [shape: f32[2,1,32], index: 3, kind: input, shape index: {}]   ;;  %s2327_s4 = inlined_call_operand.vmem [shape: f32[2,1,32], index: 4, kind: input, shape index: {}]   ;;  %s2328_s5 = inlined_call_operand.vmem [shape: bf16[2,16,16], index: 5, kind: input, shape index: {}]   ;;  %s2329_s6 = inlined_call_operand.vmem [shape: f32[2,16,1], index: 6, kind: input, shape index: {}]   ;;  %s2330_s7 = inlined_call_operand.vmem [shape: bf16[2,16,16], index: 7, kind: input, shape index: {}]   ;;  %s2331_s8 = inlined_call_operand.vmem [shape: f32[2,16,1], index: 8, kind: input, shape index: {}]   ;;  %s2332_s9 = inlined_call_operand.vmem [shape: f32[2,1,32], index: 9, kind: input, shape index: {}]   ;;  %s2333_s10 = inlined_call_operand.vmem [shape: f32[2,1,32], index: 10, kind: input, shape index: {}]   ;;  %s2334_s11 = inlined_call_operand.vmem [shape: bf16[2,32,32], index: 11, kind: input, shape index: {}]   ;;  %s2335_s12 = inlined_call_operand.vmem [shape: f32[2,1,32], index: 12, kind: input, shape index: {}]   ;;  %s2336_s13 = inlined_call_operand.vmem [shape: bf16[2,32,32], index: 13, kind: input, shape index: {}]   ;;  %s2337_s14 = inlined_call_operand.vmem [shape: f32[2,1,32], index: 14, kind: input, shape index: {}]   ;;  %s2338_s15 = inlined_call_operand.vmem [shape: f32[1,32], index: 15, kind: input, shape index: {}]   ;;  %s2339_s16 = inlined_call_operand.vmem [shape: f32[1,32], index: 16, kind: input, shape index: {}]   ;;  %s2340_s17 = inlined_call_operand.vmem [shape: bf16[32,10], index: 17, kind: input, shape index: {}]   ;;  %s2341_s18 = inlined_call_operand.vmem [shape: f32[1,10], index: 18, kind: input, shape index: {}]   ;;  %s2342_s19 = inlined_call_operand.hbm [shape: f32[1,2,10], index: 19, kind: output, shape index: {}]  }
   0x1   :  { %2346 = sst [smem:[#allocation5_spill]] %s2323_s0 }
   0x2   :  { %2347 = sst [smem:[#allocation6_spill]] %s2324_s1 }
   0x3   :  { %2348 = sst [smem:[#allocation7_spill]] %s2325_s2 }
   0x4   :  { %2349 = sst [smem:[#allocation8_spill]] %s2326_s3 }
   0x5   :  { %s2350_s20 = sld [smem:[#allocation6_spill]]  ;;  %vm109_vm0 = vcmask 392192   ;;  %s2351_s23 = sld [smem:[#allocation5_spill]] }
   0xb   :  { %v1794_v0 = vld [vmem:[%s2350_s20] sm:$0xff]   ;;  %v1795_v1 = vld [vmem:[%s2350_s20 + $0x8] sm:$0xff]   ;;  %v1796_v3 = vld [vmem:[%s2350_s20 + $0x10] sm:$0xff]  }
   0xc   :  { %1690 = vmatprep.subr.bf16.mxu0 %v1794_v0  ;;  %v1797_v2 = vld [vmem:[%s2351_s23] sm:$0xff]   ;;  %v1798_v4 = vld [vmem:[%s2351_s23 + $0x8] sm:$0xff]  }
   0xd   :  { %1691 = vmatpush3.bf16.msra.mxu0 %v1794_v0  ;;  %1696 = vmatprep.mubr.msk.bf16.mxu0 %vm109_vm0, %v1797_v2 }
   0xe   :  { %1692 = vmatprep.subr.bf16.mxu0 %v1795_v1 }
  0x11   :  { %1693 = vmatpush3.bf16.msra.mxu0 %v1795_v1 }
  0x12   :  { %1694 = vmatprep.subr.bf16.mxu0 %v1796_v3 }
  0x15   :  { %1695 = vmatpush3.bf16.msra.mxu0 %v1796_v3 }
  0x18   :  { %1697 = vmatmul.mubr.msk.bf16.vlgmr.msra.gmra.mrb[0].mxu0 %vm109_vm0, %v1798_v4 }
  0x19   :  { %24 = vsyncpa [#allocation3], 0  ;;  %s2352_s29 = sld [smem:[#allocation7_spill]]  ;;  %vm167_vm1 = vcmask 261120   ;;  %v1909_v38 = vmov 0.0   ;;  %vm1910_vm2 = vmmov 0  }
  0x1a   :  { %1700 = vmatprep.subr.bf16.mxu1 %v1909_v38  ;;  %1712 = vmatprep.subr.bf16.mxu0 %v1909_v38  ;;  %v246_v39 = vld [vmem:[%s2329_s6 + $0x8] sm:$0xff]  ;;  %v245_v40 = vld [vmem:[%s2329_s6] sm:$0xff]  ;;  %v1911_v41 = vmov 0   ;;  %s2353_s3 = sld [smem:[#allocation8_spill]]  ;;  %vm262_vm3 = vcmask 130048   ;;  %vm1500_vm4 = vcmask 1041409  }
  0x1b   :  { %1702 = vmatprep.mubr.msk.bf16.mxu1 %vm1910_vm2, %v1909_v38  ;;  %1714 = vmatprep.mubr.msk.bf16.mxu0 %vm1910_vm2, %v1909_v38  ;;  %v388_v42 = vld [vmem:[%s2331_s8] sm:$0xff]  ;;  %v389_v43 = vld [vmem:[%s2331_s8 + $0x8] sm:$0xff]  ;;  %vm1558_vm5 = vcmask 74752  }
  0x1c   :  { %1793 = vset.pattern.permute.xlu1 %v1911_v41  ;;  %1792 = vset.pattern.permute.xlu0 %v1911_v41  ;;  %v1583_v0 = vld [vmem:[%s2327_s4] ss:$0 sm:$0xff] }
  0x1f   :  { %v1574_v5 = vld [vmem:[%s2352_s29] ss:$0 sm:$0xff] }
  0x20   :  { %v1582_v58 = vld [vmem:[%s2353_s3] ss:$0 sm:$0xff] }
  0xeb   :  { %v1698_v6 = vpop.f32.mrb[0].mxu0 }
  0xec   :  { %v2031_v7 = vadd.f32 %v1698_v6, %v1574_v5  ;;  %v150_v8 = vpop.f32.mrb[1].mxu0 }
  0xed   :  { %v2033_v9 = vadd.f32 %v1574_v5, %v150_v8  ;;  %v1699_v10 = vpop.f32.mrb[2].mxu0 }
  0xee   :  { %v2035_v11 = vadd.f32 %v1699_v10, %v1574_v5  ;;  %v153_v12 = vpop.f32.mrb[3].mxu0  ;;  %v174_v13 = vsel %vm167_vm1, %v2031_v7, 0.0 }
  0xef   :  { %v2039_v14 = vadd.f32 %v1574_v5, %v153_v12  ;;  %175 = vadd.xlane.f32.xlu1 %v174_v13  ;;  %v168_v15 = vsel %vm167_vm1, %v2033_v9, 0.0  ;;  %v1799_v12 = vld [vmem:[%s2328_s5] sm:$0xff]  }
  0xf0   :  { %169 = vadd.xlane.f32.xlu0 %v168_v15  ;;  %v177_v16 = vsel %vm167_vm1, %v2035_v11, 0.0 }
  0xf1   :  { %v171_v17 = vsel %vm167_vm1, %v2039_v14, 0.0 }
  0xf3   :  { %178 = vadd.xlane.f32.xlu1 %v177_v16 }
  0xf4   :  { %172 = vadd.xlane.f32.xlu0 %v171_v17 }
 0x17c   :  { %v176_v18 = vpop.xlane.xlu1 %175 }
 0x17d   :  { %v183_v19 = vmul.f32 0.03125, %v176_v18  ;;  %v170_v20 = vpop.xlane.xlu0 %169 }
 0x17e   :  { %v181_v21 = vmul.f32 0.03125, %v170_v20 }
 0x17f   :  { %v187_v22 = vsub.f32 %v2031_v7, %v183_v19 }
 0x180   :  { %v185_v23 = vsub.f32 %v2033_v9, %v181_v21  ;;  %v179_v24 = vpop.xlane.xlu1 %178 }
 0x181   :  { %v184_v25 = vmul.f32 0.03125, %v179_v24  ;;  %v173_v26 = vpop.xlane.xlu0 %172  ;;  %v191_v32 = vmul.f32 %v187_v22, %v187_v22 }
 0x182   :  { %v182_v27 = vmul.f32 0.03125, %v173_v26  ;;  %v189_v28 = vmul.f32 %v185_v23, %v185_v23 }
 0x183   :  { %v188_v29 = vsub.f32 %v2035_v11, %v184_v25  ;;  %v199_v34 = vsel %vm167_vm1, %v191_v32, 0.0 }
 0x184   :  { %v186_v30 = vsub.f32 %v2039_v14, %v182_v27  ;;  %v193_v31 = vsel %vm167_vm1, %v189_v28, 0.0 }
 0x185   :  { %194 = vadd.xlane.f32.xlu0 %v193_v31  ;;  %v192_v36 = vmul.f32 %v188_v29, %v188_v29 }
 0x186   :  { %v190_v33 = vmul.f32 %v186_v30, %v186_v30 }
 0x187   :  { %v202_v37 = vsel %vm167_vm1, %v192_v36, 0.0 }
 0x188   :  { %v196_v35 = vsel %vm167_vm1, %v190_v33, 0.0 }
 0x189   :  { %200 = vadd.xlane.f32.xlu0 %v199_v34  ;;  %197 = vadd.xlane.f32.xlu1 %v196_v35 }
 0x18d   :  { %203 = vadd.xlane.f32.xlu1 %v202_v37 }
 0x19e   :  { %254 = vperm.xlu1 %1793, %v246_v39  }
 0x19f   :  { %249 = vperm.xlu0 %1792, %v245_v40  }
 0x1a2   :  { %392 = vperm.xlu1 %1793, %v388_v42  }
 0x1a6   :  { %397 = vperm.xlu1 %1793, %v389_v43  }
 0x212   :  { %v195_v44 = vpop.xlane.xlu0 %194 }
 0x213   :  { %v205_v45 = vmul.f32 0.03125, %v195_v44 }
 0x215   :  { %v209_v46 = vadd.f32 1e-05, %v205_v45 }
 0x216   :  { %v198_v47 = vpop.xlane.xlu1 %197  ;;  %v201_v48 = vpop.xlane.xlu0 %200 }
 0x217   :  { %1813 = vrsqrt.f32 %v209_v46  ;;  %v206_v49 = vmul.f32 0.03125, %v198_v47  ;;  %v207_v50 = vmul.f32 0.03125, %v201_v48 }
 0x219   :  { %v210_v51 = vadd.f32 1e-05, %v206_v49  ;;  %v211_v52 = vadd.f32 1e-05, %v207_v50 }
 0x21a   :  { %v204_v53 = vpop.xlane.xlu1 %203 }
 0x21b   :  { %1815 = vrsqrt.f32 %v210_v51  ;;  %v208_v54 = vmul.f32 0.03125, %v204_v53 }
 0x21c   :  { %1817 = vrsqrt.f32 %v211_v52 }
 0x21d   :  { %v212_v55 = vadd.f32 1e-05, %v208_v54 }
 0x21e   :  { %v250_v17 = vpop.permute.xlu0 %249  ;;  %v255_v21 = vpop.permute.xlu1 %254 }
 0x21f   :  { %1819 = vrsqrt.f32 %v212_v55 }
 0x221   :  { %v1814_v56 = vpop.eup %1813 }
 0x222   :  { %v217_v57 = vmul.f32 %v1814_v56, %v185_v23 }
 0x224   :  { %v227_v62 = vmul.f32 %v1582_v58, %v217_v57 }
 0x225   :  { %v1816_v59 = vpop.eup %1815 }
 0x226   :  { %v1818_v60 = vpop.eup %1817  ;;  %v218_v61 = vmul.f32 %v1816_v59, %v186_v30  ;;  %v237_v4 = vadd.f32 %v1583_v0, %v227_v62  ;;  %v1800_v62 = vld [vmem:[%s2330_s7] sm:$0xff]  }
 0x227   :  { %v219_v63 = vmul.f32 %v1818_v60, %v187_v22 }
 0x228   :  { %v228_v1 = vmul.f32 %v1582_v58, %v218_v61 }
 0x229   :  { %v1820_v2 = vpop.eup %1819  ;;  %v229_v6 = vmul.f32 %v1582_v58, %v219_v63 }
 0x22a   :  { %v220_v3 = vmul.f32 %v1820_v2, %v188_v29  ;;  %v238_v5 = vadd.f32 %v1583_v0, %v228_v1 }
 0x22b   :  { %v239_v13 = vadd.f32 %v1583_v0, %v229_v6 }
 0x22c   :  { %v241_v8 = vpack.c.bf16 %v238_v5, %v237_v4  ;;  %v230_v10 = vmul.f32 %v1582_v58, %v220_v3 }
 0x22e   :  { %1701 = vmatpush3.bf16.msra.mxu1 %v241_v8  ;;  %v240_v15 = vadd.f32 %v1583_v0, %v230_v10  ;;  %v393_v8 = vpop.permute.xlu1 %392 }
 0x22f   :  { %1706 = vmatprep.subr.bf16.mxu1 %v1909_v38 }
 0x230   :  { %v242_v16 = vpack.c.bf16 %v240_v15, %v239_v13 }
 0x231   :  { %1703 = vmatmul.mubr.msk.bf16.vlgmr.msra.gmra.mrb[0].mxu1 %vm262_vm3, %v1799_v12 }
 0x232   :  { %1707 = vmatpush3.bf16.msra.mxu1 %v242_v16  ;;  %1708 = vmatprep.mubr.msk.bf16.mxu1 %vm1910_vm2, %v1909_v38  ;;  %v398_v15 = vpop.permute.xlu1 %397 }
 0x233   :  { %1718 = vmatprep.subr.bf16.mxu1 %v1909_v38 }
 0x239   :  { %1709 = vmatmul.mubr.msk.bf16.vlgmr.msra.gmra.mrb[4].mxu1 %vm262_vm3, %v1799_v12 }
 0x23a   :  { %1720 = vmatprep.mubr.msk.bf16.mxu1 %vm1910_vm2, %v1909_v38 }
 0x304   :  { %v300_v18 = vpop.f32.mrb[0].mxu1 }
 0x305   :  { %v301_v19 = vadd.f32 %v300_v18, %v250_v17  ;;  %v1704_v20 = vpop.f32.mrb[1].mxu1 }
 0x306   :  { %v303_v22 = vpop.f32.mrb[2].mxu1 }
 0x307   :  { %v352_v23 = vmul.f32 %v301_v19, %v301_v19  ;;  %v304_v24 = vadd.f32 %v303_v22, %v255_v21  ;;  %v1705_v25 = vpop.f32.mrb[3].mxu1  ;;  %v348_v55 = vmul.f32 0.5, %v301_v19 }
 0x309   :  { %v356_v26 = vmul.f32 %v352_v23, %v301_v19  ;;  %v353_v27 = vmul.f32 %v304_v24, %v304_v24  ;;  %v349_v56 = vmul.f32 0.5, %v304_v24 }
 0x30b   :  { %v360_v28 = vmul.f32 0.044715, %v356_v26  ;;  %v357_v29 = vmul.f32 %v353_v27, %v304_v24 }
 0x30c   :  { %v341_v30 = vpop.f32.mrb[4].mxu1 }
 0x30d   :  { %v364_v31 = vadd.f32 %v360_v28, %v301_v19  ;;  %v361_v32 = vmul.f32 0.044715, %v357_v29  ;;  %v342_v33 = vadd.f32 %v341_v30, %v250_v17  ;;  %v1710_v34 = vpop.f32.mrb[5].mxu1 }
 0x30e   :  { %v344_v35 = vpop.f32.mrb[6].mxu1 }
 0x30f   :  { %v368_v36 = vmul.f32 0.7978846, %v364_v31  ;;  %v365_v37 = vadd.f32 %v361_v32, %v304_v24  ;;  %v354_v39 = vmul.f32 %v342_v33, %v342_v33  ;;  %v1711_v40 = vpop.f32.mrb[7].mxu1  ;;  %v345_v41 = vadd.f32 %v344_v35, %v255_v21 }
 0x310   :  { %v350_v1 = vmul.f32 0.5, %v342_v33 }
 0x311   :  { %1821 = vtanh.f32 %v368_v36  ;;  %v369_v42 = vmul.f32 0.7978846, %v365_v37  ;;  %v358_v43 = vmul.f32 %v354_v39, %v342_v33  ;;  %v355_v44 = vmul.f32 %v345_v41, %v345_v41 }
 0x312   :  { %v351_v2 = vmul.f32 0.5, %v345_v41 }
 0x313   :  { %1823 = vtanh.f32 %v369_v42  ;;  %v362_v45 = vmul.f32 0.044715, %v358_v43  ;;  %v359_v46 = vmul.f32 %v355_v44, %v345_v41 }
 0x315   :  { %v366_v47 = vadd.f32 %v362_v45, %v342_v33  ;;  %v363_v48 = vmul.f32 0.044715, %v359_v46 }
 0x317   :  { %v370_v49 = vmul.f32 0.7978846, %v366_v47  ;;  %v367_v50 = vadd.f32 %v363_v48, %v345_v41 }
 0x319   :  { %1825 = vtanh.f32 %v370_v49  ;;  %v371_v51 = vmul.f32 0.7978846, %v367_v50  ;;  %v1801_v50 = vld [vmem:[%s2334_s11] sm:$0xff]  }
 0x31b   :  { %v1822_v52 = vpop.eup %1821  ;;  %1827 = vtanh.f32 %v371_v51  ;;  %v1802_v51 = vld [vmem:[%s2334_s11 + $0x8] sm:$0xff]  }
 0x31c   :  { %v376_v53 = vadd.f32 1.0, %v1822_v52 }
 0x31d   :  { %v1824_v54 = vpop.eup %1823 }
 0x31e   :  { %v377_v57 = vadd.f32 1.0, %v1824_v54  ;;  %v380_v58 = vmul.f32 %v376_v53, %v348_v55 }
 0x320   :  { %v381_v59 = vmul.f32 %v377_v57, %v349_v56 }
 0x322   :  { %v384_v60 = vpack.c.bf16 %v381_v59, %v380_v58 }
 0x323   :  { %v1826_v61 = vpop.eup %1825 }
 0x324   :  { %1713 = vmatpush3.bf16.msra.mxu0 %v384_v60  ;;  %v378_v63 = vadd.f32 1.0, %v1826_v61 }
 0x325   :  { %v1828_v0 = vpop.eup %1827  ;;  %1724 = vmatprep.subr.bf16.mxu0 %v1801_v50 }
 0x326   :  { %v379_v3 = vadd.f32 1.0, %v1828_v0  ;;  %v382_v4 = vmul.f32 %v378_v63, %v350_v1 }
 0x327   :  { %1715 = vmatmul.mubr.msk.bf16.vlgmr.msra.gmra.mrb[4].mxu0 %vm262_vm3, %v1800_v62 }
 0x328   :  { %v383_v5 = vmul.f32 %v379_v3, %v351_v2  ;;  %1725 = vmatpush3.bf16.msra.mxu0 %v1801_v50  ;;  %v1590_v2 = vld [vmem:[%s2332_s9] ss:$0 sm:$0xff] }
 0x329   :  { %1726 = vmatprep.subr.bf16.mxu0 %v1802_v51 }
 0x32a   :  { %v385_v6 = vpack.c.bf16 %v383_v5, %v382_v4 }
 0x32c   :  { %1719 = vmatpush3.bf16.msra.mxu1 %v385_v6  ;;  %1727 = vmatpush3.bf16.msra.mxu0 %v1802_v51  ;;  %v1591_v6 = vld [vmem:[%s2333_s10] ss:$0 sm:$0xff] }
 0x32d   :  { %1740 = vmatprep.subr.bf16.mxu0 %v1909_v38 }
 0x32f   :  { %1721 = vmatmul.mubr.msk.bf16.vlgmr.msra.gmra.mrb[8].mxu1 %vm262_vm3, %v1800_v62 }
 0x3fa   :  { %v442_v10 = vpop.f32.mrb[4].mxu0 }
 0x3fb   :  { %v443_v12 = vadd.f32 %v442_v10, %v393_v8  ;;  %v1716_v13 = vpop.f32.mrb[5].mxu0 }
 0x3fc   :  { %v445_v16 = vpop.f32.mrb[6].mxu0 }
 0x3fd   :  { %v2096_v17 = vadd.f32 %v443_v12, %v2033_v9  ;;  %v446_v18 = vadd.f32 %v445_v16, %v398_v15  ;;  %v1717_v19 = vpop.f32.mrb[7].mxu0 }
 0x3ff   :  { %v2099_v20 = vadd.f32 %v446_v18, %v2039_v14  ;;  %v496_v21 = vsel %vm167_vm1, %v2096_v17, 0.0 }
 0x400   :  { %497 = vadd.xlane.f32.xlu1 %v496_v21 }
 0x401   :  { %v499_v22 = vsel %vm167_vm1, %v2099_v20, 0.0 }
 0x402   :  { %500 = vadd.xlane.f32.xlu0 %v499_v22  ;;  %v483_v23 = vpop.f32.mrb[8].mxu1 }
 0x403   :  { %v484_v24 = vadd.f32 %v483_v23, %v393_v8  ;;  %v1722_v25 = vpop.f32.mrb[9].mxu1 }
 0x404   :  { %v486_v26 = vpop.f32.mrb[10].mxu1 }
 0x405   :  { %v2106_v9 = vadd.f32 %v484_v24, %v2031_v7  ;;  %v487_v27 = vadd.f32 %v486_v26, %v398_v15  ;;  %v1723_v28 = vpop.f32.mrb[11].mxu1  ;;  %v1803_v26 = vld [vmem:[%s2336_s13] sm:$0xff]  }
 0x406   :  { %1732 = vmatprep.subr.bf16.mxu1 %v1803_v26  ;;  %v1592_v28 = vld [vmem:[%s2335_s12] ss:$0 sm:$0xff] }
 0x407   :  { %v2109_v14 = vadd.f32 %v487_v27, %v2035_v11  ;;  %v502_v29 = vsel %vm167_vm1, %v2106_v9, 0.0  ;;  %1733 = vmatpush3.bf16.msra.mxu1 %v1803_v26  ;;  %v1804_v27 = vld [vmem:[%s2336_s13 + $0x8] sm:$0xff]  }
 0x408   :  { %503 = vadd.xlane.f32.xlu1 %v502_v29  ;;  %1734 = vmatprep.subr.bf16.mxu1 %v1804_v27 }
 0x409   :  { %v505_v30 = vsel %vm167_vm1, %v2109_v14, 0.0 }
 0x40b   :  { %1735 = vmatpush3.bf16.msra.mxu1 %v1804_v27 }
 0x40c   :  { %506 = vadd.xlane.f32.xlu1 %v505_v30  ;;  %1746 = vmatprep.subr.bf16.mxu1 %v1909_v38 }
 0x48d   :  { %v498_v31 = vpop.xlane.xlu1 %497 }
 0x48e   :  { %v508_v32 = vmul.f32 0.03125, %v498_v31 }
 0x48f   :  { %v501_v33 = vpop.xlane.xlu0 %500 }
 0x490   :  { %v512_v34 = vsub.f32 %v2096_v17, %v508_v32  ;;  %v509_v7 = vmul.f32 0.03125, %v501_v33 }
 0x492   :  { %v513_v35 = vsub.f32 %v2099_v20, %v509_v7  ;;  %v516_v36 = vmul.f32 %v512_v34, %v512_v34 }
 0x494   :  { %v520_v11 = vsel %vm167_vm1, %v516_v36, 0.0  ;;  %v517_v37 = vmul.f32 %v513_v35, %v513_v35 }
 0x495   :  { %521 = vadd.xlane.f32.xlu1 %v520_v11  ;;  %v504_v39 = vpop.xlane.xlu1 %503 }
 0x496   :  { %v510_v40 = vmul.f32 0.03125, %v504_v39  ;;  %v523_v41 = vsel %vm167_vm1, %v517_v37, 0.0 }
 0x498   :  { %v514_v42 = vsub.f32 %v2106_v9, %v510_v40 }
 0x499   :  { %524 = vadd.xlane.f32.xlu1 %v523_v41  ;;  %v507_v43 = vpop.xlane.xlu1 %506 }
 0x49a   :  { %v511_v44 = vmul.f32 0.03125, %v507_v43  ;;  %v518_v45 = vmul.f32 %v514_v42, %v514_v42 }
 0x49c   :  { %v515_v46 = vsub.f32 %v2109_v14, %v511_v44  ;;  %v526_v47 = vsel %vm167_vm1, %v518_v45, 0.0 }
 0x49d   :  { %527 = vadd.xlane.f32.xlu0 %v526_v47 }
 0x49e   :  { %v519_v48 = vmul.f32 %v515_v46, %v515_v46 }
 0x4a0   :  { %v529_v49 = vsel %vm167_vm1, %v519_v48, 0.0 }
 0x4a1   :  { %530 = vadd.xlane.f32.xlu1 %v529_v49 }
 0x522   :  { %v522_v52 = vpop.xlane.xlu1 %521 }
 0x523   :  { %v532_v53 = vmul.f32 0.03125, %v522_v52 }
 0x525   :  { %v536_v54 = vadd.f32 1e-05, %v532_v53 }
 0x526   :  { %v525_v55 = vpop.xlane.xlu1 %524 }
 0x527   :  { %1829 = vrsqrt.f32 %v536_v54  ;;  %v533_v56 = vmul.f32 0.03125, %v525_v55 }
 0x529   :  { %v537_v57 = vadd.f32 1e-05, %v533_v56 }
 0x52a   :  { %v528_v58 = vpop.xlane.xlu0 %527 }
 0x52b   :  { %1831 = vrsqrt.f32 %v537_v57  ;;  %v534_v59 = vmul.f32 0.03125, %v528_v58 }
 0x52d   :  { %v538_v60 = vadd.f32 1e-05, %v534_v59 }
 0x52e   :  { %v531_v61 = vpop.xlane.xlu1 %530 }
 0x52f   :  { %1833 = vrsqrt.f32 %v538_v60  ;;  %v535_v62 = vmul.f32 0.03125, %v531_v61 }
 0x531   :  { %v1830_v63 = vpop.eup %1829  ;;  %v539_v1 = vadd.f32 1e-05, %v535_v62 }
 0x532   :  { %v544_v0 = vmul.f32 %v1830_v63, %v512_v34 }
 0x533   :  { %1835 = vrsqrt.f32 %v539_v1 }
 0x534   :  { %v554_v5 = vmul.f32 %v1590_v2, %v544_v0 }
 0x535   :  { %v1832_v3 = vpop.eup %1831 }
 0x536   :  { %v545_v4 = vmul.f32 %v1832_v3, %v513_v35  ;;  %v564_v12 = vadd.f32 %v1591_v6, %v554_v5 }
 0x538   :  { %v555_v8 = vmul.f32 %v1590_v2, %v545_v4 }
 0x539   :  { %v1834_v10 = vpop.eup %1833 }
 0x53a   :  { %v565_v13 = vadd.f32 %v1591_v6, %v555_v8  ;;  %v546_v15 = vmul.f32 %v1834_v10, %v514_v42 }
 0x53c   :  { %v568_v16 = vpack.c.bf16 %v565_v13, %v564_v12  ;;  %v556_v19 = vmul.f32 %v1590_v2, %v546_v15  ;;  %v1601_v15 = vld [vmem:[%s2337_s14] ss:$0 sm:$0xff] }
 0x53d   :  { %v1836_v18 = vpop.eup %1835 }
 0x53e   :  { %1728 = vmatprep.mubr.msk.bf16.mxu0 %vm167_vm1, %v568_v16  ;;  %v547_v21 = vmul.f32 %v1836_v18, %v515_v46  ;;  %v566_v23 = vadd.f32 %v1591_v6, %v556_v19 }
 0x540   :  { %v557_v22 = vmul.f32 %v1590_v2, %v547_v21 }
 0x542   :  { %v567_v24 = vadd.f32 %v1591_v6, %v557_v22 }
 0x544   :  { %v569_v25 = vpack.c.bf16 %v567_v24, %v566_v23 }
 0x546   :  { %1729 = vmatmul.mubr.msk.bf16.vlgmr.msra.gmra.mrb[8].mxu0 %vm167_vm1, %v569_v25 }
 0x547   :  { %1742 = vmatprep.mubr.msk.bf16.mxu0 %vm1910_vm2, %v1909_v38 }
 0x619   :  { %v1730_v29 = vpop.f32.mrb[8].mxu0 }
 0x61a   :  { %v642_v30 = vadd.f32 %v1730_v29, %v1592_v28  ;;  %v633_v31 = vpop.f32.mrb[9].mxu0 }
 0x61b   :  { %v634_v32 = vadd.f32 %v1592_v28, %v633_v31  ;;  %v1731_v33 = vpop.f32.mrb[10].mxu0 }
 0x61c   :  { %v654_v34 = vmul.f32 %v642_v30, %v642_v30  ;;  %v645_v7 = vadd.f32 %v1731_v33, %v1592_v28  ;;  %v636_v35 = vpop.f32.mrb[11].mxu0  ;;  %v650_v62 = vmul.f32 0.5, %v642_v30 }
 0x61d   :  { %v652_v36 = vmul.f32 %v634_v32, %v634_v32  ;;  %v637_v11 = vadd.f32 %v1592_v28, %v636_v35  ;;  %v648_v1 = vmul.f32 0.5, %v634_v32 }
 0x61e   :  { %v658_v37 = vmul.f32 %v654_v34, %v642_v30  ;;  %v655_v39 = vmul.f32 %v645_v7, %v645_v7  ;;  %v651_v63 = vmul.f32 0.5, %v645_v7 }
 0x61f   :  { %v656_v40 = vmul.f32 %v652_v36, %v634_v32  ;;  %v653_v41 = vmul.f32 %v637_v11, %v637_v11  ;;  %v649_v2 = vmul.f32 0.5, %v637_v11 }
 0x620   :  { %v662_v42 = vmul.f32 0.044715, %v658_v37  ;;  %v659_v43 = vmul.f32 %v655_v39, %v645_v7 }
 0x621   :  { %v660_v44 = vmul.f32 0.044715, %v656_v40  ;;  %v657_v45 = vmul.f32 %v653_v41, %v637_v11 }
 0x622   :  { %v666_v46 = vadd.f32 %v662_v42, %v642_v30  ;;  %v663_v47 = vmul.f32 0.044715, %v659_v43 }
 0x623   :  { %v664_v48 = vadd.f32 %v660_v44, %v634_v32  ;;  %v661_v49 = vmul.f32 0.044715, %v657_v45 }
 0x624   :  { %v670_v50 = vmul.f32 0.7978846, %v666_v46  ;;  %v667_v51 = vadd.f32 %v663_v47, %v645_v7 }
 0x625   :  { %v668_v52 = vmul.f32 0.7978846, %v664_v48  ;;  %v665_v53 = vadd.f32 %v661_v49, %v637_v11  ;;  %v1609_v48 = vld [vmem:[%s2329_s6 + $0x18] sm:$0xff]  ;;  %v1608_v49 = vld [vmem:[%s2329_s6 + $0x10] sm:$0xff] }
 0x626   :  { %1837 = vtanh.f32 %v670_v50  ;;  %v671_v54 = vmul.f32 0.7978846, %v667_v51  ;;  %v1615_v50 = vld [vmem:[%s2331_s8 + $0x10] sm:$0xff]  ;;  %v1616_v51 = vld [vmem:[%s2331_s8 + $0x18] sm:$0xff] }
 0x627   :  { %1839 = vtanh.f32 %v668_v52  ;;  %v669_v55 = vmul.f32 0.7978846, %v665_v53 }
 0x628   :  { %1841 = vtanh.f32 %v671_v54 }
 0x629   :  { %1843 = vtanh.f32 %v669_v55 }
 0x630   :  { %v1838_v56 = vpop.eup %1837 }
 0x631   :  { %v1840_v57 = vpop.eup %1839  ;;  %v678_v58 = vadd.f32 1.0, %v1838_v56 }
 0x632   :  { %v1842_v59 = vpop.eup %1841  ;;  %v676_v60 = vadd.f32 1.0, %v1840_v57 }
 0x633   :  { %v1844_v61 = vpop.eup %1843  ;;  %v679_v0 = vadd.f32 1.0, %v1842_v59  ;;  %v682_v4 = vmul.f32 %v678_v58, %v650_v62 }
 0x634   :  { %v677_v3 = vadd.f32 1.0, %v1844_v61  ;;  %v680_v6 = vmul.f32 %v676_v60, %v648_v1  ;;  %v1604_v1 = vld [vmem:[%s2353_s3 + $0x1] ss:$0 sm:$0xff]  ;;  %s1912_s3 = smov [#allocation2]  }
 0x635   :  { %v683_v5 = vmul.f32 %v679_v0, %v651_v63 }
 0x636   :  { %v681_v8 = vmul.f32 %v677_v3, %v649_v2 }
 0x637   :  { %v685_v10 = vpack.c.bf16 %v683_v5, %v682_v4 }
 0x638   :  { %v684_v12 = vpack.c.bf16 %v681_v8, %v680_v6  ;;  %v1605_v8 = vld [vmem:[%s2327_s4 + $0x1] ss:$0 sm:$0xff]  ;;  %s1566_s4 = sshll.u32 %s1912_s3, 4  ;;  %s1567_s4 = int_to_ptr.vmem [resolvable:$true] %s1566_s4 }
 0x639   :  { %p1890_p1 = scmp.lt.s32.totalorder %s1567_s4, %s1567_s4 }
 0x63a   :  { %1736 = vmatprep.mubr.msk.bf16.mxu1 %vm167_vm1, %v684_v12 }
 0x63b   :  { %1737 = vmatmul.mubr.msk.bf16.vlgmr.msra.gmra.mrb[12].mxu1 %vm167_vm1, %v685_v10 }
 0x63c   :  { %1748 = vmatprep.mubr.msk.bf16.mxu1 %vm1910_vm2, %v1909_v38 }
 0x70e   :  { %v1738_v13 = vpop.f32.mrb[12].mxu1 }
 0x70f   :  { %v742_v16 = vpop.f32.mrb[13].mxu1  ;;  %v759_v18 = vadd.f32 %v1738_v13, %v2106_v9 }
 0x710   :  { %v757_v19 = vadd.f32 %v742_v16, %v2096_v17  ;;  %v1739_v21 = vpop.f32.mrb[14].mxu1 }
 0x711   :  { %v745_v22 = vpop.f32.mrb[15].mxu1  ;;  %v760_v24 = vadd.f32 %v1739_v21, %v2109_v14  ;;  %v2163_v26 = vadd.f32 %v1601_v15, %v759_v18 }
 0x712   :  { %v2159_v23 = vadd.f32 %v1601_v15, %v757_v19  ;;  %v758_v25 = vadd.f32 %v745_v22, %v2099_v20 }
 0x713   :  { %v2169_v29 = vadd.f32 %v1601_v15, %v760_v24  ;;  %v782_v9 = vsel %vm167_vm1, %v2163_v26, 0.0  ;;  %v1805_v24 = vld [vmem:[%s2328_s5 + $0x8] sm:$0xff]   ;;  %s1885_s5 = scalar_lea.vmem %s1567_s4, 32 }
 0x714   :  { %v2165_v27 = vadd.f32 %v1601_v15, %v758_v25  ;;  %v776_v28 = vsel %vm167_vm1, %v2159_v23, 0.0  ;;  %p1886_p0 = scmp.ne.s32.totalorder %s1567_s4, %s1885_s5  ;;  %p1891_p2 = scmp.lt.s32.totalorder %s1885_s5, %s1885_s5 }
 0x715   :  { %777 = vadd.xlane.f32.xlu0 %v776_v28  ;;  %v785_v20 = vsel %vm167_vm1, %v2169_v29, 0.0 }
 0x716   :  { %v779_v17 = vsel %vm167_vm1, %v2165_v27, 0.0  ;;  %p1892_p3 = por %p1891_p2, %p1890_p1 }
 0x717   :  { %780 = vadd.xlane.f32.xlu1 %v779_v17 }
 0x718   :  { %p1893_p4 = pnand %p1892_p3, %p1886_p0 }
 0x719   :  { %783 = vadd.xlane.f32.xlu0 %v782_v9 }
 0x71b   :  { %786 = vadd.xlane.f32.xlu1 %v785_v20 }
 0x7a2   :  { %v778_v14 = vpop.xlane.xlu0 %777 }
 0x7a3   :  { %v788_v30 = vmul.f32 0.03125, %v778_v14 }
 0x7a4   :  { %v781_v31 = vpop.xlane.xlu1 %780 }
 0x7a5   :  { %v792_v32 = vsub.f32 %v2159_v23, %v788_v30  ;;  %v789_v33 = vmul.f32 0.03125, %v781_v31 }
 0x7a6   :  { %v784_v34 = vpop.xlane.xlu0 %783 }
 0x7a7   :  { %v793_v7 = vsub.f32 %v2165_v27, %v789_v33  ;;  %v790_v35 = vmul.f32 0.03125, %v784_v34  ;;  %v796_v36 = vmul.f32 %v792_v32, %v792_v32 }
 0x7a8   :  { %v787_v11 = vpop.xlane.xlu1 %786 }
 0x7a9   :  { %v794_v37 = vsub.f32 %v2163_v26, %v790_v35  ;;  %v791_v39 = vmul.f32 0.03125, %v787_v11  ;;  %v800_v40 = vsel %vm167_vm1, %v796_v36, 0.0  ;;  %v797_v41 = vmul.f32 %v793_v7, %v793_v7 }
 0x7aa   :  { %801 = vadd.xlane.f32.xlu0 %v800_v40 }
 0x7ab   :  { %v795_v42 = vsub.f32 %v2169_v29, %v791_v39  ;;  %v803_v43 = vsel %vm167_vm1, %v797_v41, 0.0  ;;  %v798_v44 = vmul.f32 %v794_v37, %v794_v37 }
 0x7ac   :  { %804 = vadd.xlane.f32.xlu1 %v803_v43 }
 0x7ad   :  { %v806_v45 = vsel %vm167_vm1, %v798_v44, 0.0  ;;  %v799_v46 = vmul.f32 %v795_v42, %v795_v42 }
 0x7ae   :  { %807 = vadd.xlane.f32.xlu0 %v806_v45 }
 0x7af   :  { %v809_v47 = vsel %vm167_vm1, %v799_v46, 0.0 }
 0x7b0   :  { %810 = vadd.xlane.f32.xlu1 %v809_v47 }
 0x7c1   :  { %863 = vperm.xlu1 %1793, %v1609_v48  }
 0x7c4   :  { %858 = vperm.xlu0 %1792, %v1608_v49  }
 0x7c5   :  { %1002 = vperm.xlu1 %1793, %v1615_v50  }
 0x7c8   :  { %1007 = vperm.xlu0 %1792, %v1616_v51  }
 0x837   :  { %v802_v52 = vpop.xlane.xlu0 %801 }
 0x838   :  { %v812_v53 = vmul.f32 0.03125, %v802_v52 }
 0x839   :  { %v805_v54 = vpop.xlane.xlu1 %804 }
 0x83a   :  { %v816_v55 = vadd.f32 1e-05, %v812_v53  ;;  %v813_v56 = vmul.f32 0.03125, %v805_v54 }
 0x83b   :  { %v808_v57 = vpop.xlane.xlu0 %807 }
 0x83c   :  { %1845 = vrsqrt.f32 %v816_v55  ;;  %v817_v58 = vadd.f32 1e-05, %v813_v56  ;;  %v814_v59 = vmul.f32 0.03125, %v808_v57 }
 0x83d   :  { %v811_v60 = vpop.xlane.xlu1 %810 }
 0x83e   :  { %1847 = vrsqrt.f32 %v817_v58  ;;  %v818_v61 = vadd.f32 1e-05, %v814_v59  ;;  %v815_v62 = vmul.f32 0.03125, %v811_v60 }
 0x840   :  { %1849 = vrsqrt.f32 %v818_v61  ;;  %v819_v63 = vadd.f32 1e-05, %v815_v62 }
 0x841   :  { %v864_v31 = vpop.permute.xlu1 %863 }
 0x842   :  { %1851 = vrsqrt.f32 %v819_v63 }
 0x843   :  { %v859_v9 = vpop.permute.xlu0 %858 }
 0x846   :  { %v1846_v0 = vpop.eup %1845 }
 0x847   :  { %v824_v2 = vmul.f32 %v1846_v0, %v792_v32 }
 0x848   :  { %v1848_v3 = vpop.eup %1847 }
 0x849   :  { %v825_v4 = vmul.f32 %v1848_v3, %v793_v7  ;;  %v834_v5 = vmul.f32 %v1604_v1, %v824_v2 }
 0x84a   :  { %v1850_v6 = vpop.eup %1849 }
 0x84b   :  { %v826_v10 = vmul.f32 %v1850_v6, %v794_v37  ;;  %v835_v12 = vmul.f32 %v1604_v1, %v825_v4  ;;  %v844_v16 = vadd.f32 %v1605_v8, %v834_v5 }
 0x84c   :  { %v1852_v13 = vpop.eup %1851 }
 0x84d   :  { %v827_v15 = vmul.f32 %v1852_v13, %v795_v42  ;;  %v845_v18 = vadd.f32 %v1605_v8, %v835_v12  ;;  %v836_v19 = vmul.f32 %v1604_v1, %v826_v10  ;;  %v1806_v13 = vld [vmem:[%s2330_s7 + $0x8] sm:$0xff]  }
 0x84f   :  { %v848_v21 = vpack.c.bf16 %v845_v18, %v844_v16  ;;  %v837_v22 = vmul.f32 %v1604_v1, %v827_v15  ;;  %v846_v25 = vadd.f32 %v1605_v8, %v836_v19 }
 0x851   :  { %1741 = vmatpush3.bf16.msra.mxu0 %v848_v21  ;;  %v847_v28 = vadd.f32 %v1605_v8, %v837_v22  ;;  %v1003_v21 = vpop.permute.xlu1 %1002 }
 0x852   :  { %1752 = vmatprep.subr.bf16.mxu0 %v1909_v38 }
 0x853   :  { %v849_v17 = vpack.c.bf16 %v847_v28, %v846_v25  ;;  %v1008_v28 = vpop.permute.xlu0 %1007 }
 0x854   :  { %1743 = vmatmul.mubr.msk.bf16.vlgmr.msra.gmra.mrb[12].mxu0 %vm262_vm3, %v1805_v24 }
 0x855   :  { %1747 = vmatpush3.bf16.msra.mxu1 %v849_v17  ;;  %1754 = vmatprep.mubr.msk.bf16.mxu0 %vm1910_vm2, %v1909_v38 }
 0x856   :  { %1758 = vmatprep.subr.bf16.mxu1 %v1909_v38 }
 0x858   :  { %1749 = vmatmul.mubr.msk.bf16.vlgmr.msra.gmra.mrb[16].mxu1 %vm262_vm3, %v1805_v24 }
 0x859   :  { %1760 = vmatprep.mubr.msk.bf16.mxu1 %vm1910_vm2, %v1909_v38 }
 0x927   :  { %v908_v20 = vpop.f32.mrb[12].mxu0 }
 0x928   :  { %v909_v14 = vadd.f32 %v908_v20, %v859_v9  ;;  %v1744_v30 = vpop.f32.mrb[13].mxu0 }
 0x929   :  { %v911_v32 = vpop.f32.mrb[14].mxu0 }
 0x92a   :  { %v960_v33 = vmul.f32 %v909_v14, %v909_v14  ;;  %v912_v34 = vadd.f32 %v911_v32, %v864_v31  ;;  %v1745_v7 = vpop.f32.mrb[15].mxu0  ;;  %v956_v63 = vmul.f32 0.5, %v909_v14 }
 0x92b   :  { %v949_v35 = vpop.f32.mrb[16].mxu1 }
 0x92c   :  { %v964_v36 = vmul.f32 %v960_v33, %v909_v14  ;;  %v961_v11 = vmul.f32 %v912_v34, %v912_v34  ;;  %v950_v37 = vadd.f32 %v949_v35, %v859_v9  ;;  %v1750_v39 = vpop.f32.mrb[17].mxu1  ;;  %v957_v0 = vmul.f32 0.5, %v912_v34 }
 0x92d   :  { %v952_v40 = vpop.f32.mrb[18].mxu1 }
 0x92e   :  { %v968_v41 = vmul.f32 0.044715, %v964_v36  ;;  %v965_v42 = vmul.f32 %v961_v11, %v912_v34  ;;  %v962_v43 = vmul.f32 %v950_v37, %v950_v37  ;;  %v1751_v44 = vpop.f32.mrb[19].mxu1  ;;  %v953_v45 = vadd.f32 %v952_v40, %v864_v31 }
 0x92f   :  { %v958_v10 = vmul.f32 0.5, %v950_v37 }
 0x930   :  { %v972_v46 = vadd.f32 %v968_v41, %v909_v14  ;;  %v969_v47 = vmul.f32 0.044715, %v965_v42  ;;  %v966_v48 = vmul.f32 %v962_v43, %v950_v37  ;;  %v963_v49 = vmul.f32 %v953_v45, %v953_v45 }
 0x931   :  { %v959_v12 = vmul.f32 0.5, %v953_v45 }
 0x932   :  { %v976_v50 = vmul.f32 0.7978846, %v972_v46  ;;  %v973_v51 = vadd.f32 %v969_v47, %v912_v34  ;;  %v970_v52 = vmul.f32 0.044715, %v966_v48  ;;  %v967_v53 = vmul.f32 %v963_v49, %v953_v45 }
 0x934   :  { %1853 = vtanh.f32 %v976_v50  ;;  %v977_v54 = vmul.f32 0.7978846, %v973_v51  ;;  %v974_v55 = vadd.f32 %v970_v52, %v950_v37  ;;  %v971_v56 = vmul.f32 0.044715, %v967_v53 }
 0x936   :  { %1855 = vtanh.f32 %v977_v54  ;;  %v978_v57 = vmul.f32 0.7978846, %v974_v55  ;;  %v975_v58 = vadd.f32 %v971_v56, %v953_v45 }
 0x938   :  { %1857 = vtanh.f32 %v978_v57  ;;  %v979_v59 = vmul.f32 0.7978846, %v975_v58  ;;  %v1807_v58 = vld [vmem:[%s2334_s11 + $0x10] sm:$0xff]  }
 0x93a   :  { %1859 = vtanh.f32 %v979_v59  ;;  %v1808_v59 = vld [vmem:[%s2334_s11 + $0x18] sm:$0xff]  }
 0x93e   :  { %v1854_v60 = vpop.eup %1853 }
 0x93f   :  { %v984_v61 = vadd.f32 1.0, %v1854_v60 }
 0x940   :  { %v1856_v62 = vpop.eup %1855 }
 0x941   :  { %v985_v1 = vadd.f32 1.0, %v1856_v62  ;;  %v988_v3 = vmul.f32 %v984_v61, %v956_v63 }
 0x942   :  { %v1858_v2 = vpop.eup %1857 }
 0x943   :  { %v989_v4 = vmul.f32 %v985_v1, %v957_v0  ;;  %v986_v5 = vadd.f32 1.0, %v1858_v2 }
 0x944   :  { %v1860_v6 = vpop.eup %1859 }
 0x945   :  { %v992_v8 = vpack.c.bf16 %v989_v4, %v988_v3  ;;  %v987_v15 = vadd.f32 1.0, %v1860_v6  ;;  %v990_v16 = vmul.f32 %v986_v5, %v958_v10 }
 0x947   :  { %1753 = vmatpush3.bf16.msra.mxu0 %v992_v8  ;;  %v991_v18 = vmul.f32 %v987_v15, %v959_v12  ;;  %v1622_v12 = vld [vmem:[%s2332_s9 + $0x1] ss:$0 sm:$0xff] }
 0x948   :  { %1764 = vmatprep.subr.bf16.mxu0 %v1807_v58 }
 0x949   :  { %v993_v19 = vpack.c.bf16 %v991_v18, %v990_v16 }
 0x94a   :  { %1755 = vmatmul.mubr.msk.bf16.vlgmr.msra.gmra.mrb[16].mxu0 %vm262_vm3, %v1806_v13 }
 0x94b   :  { %1759 = vmatpush3.bf16.msra.mxu1 %v993_v19  ;;  %1765 = vmatpush3.bf16.msra.mxu0 %v1807_v58  ;;  %v1623_v19 = vld [vmem:[%s2333_s10 + $0x1] ss:$0 sm:$0xff] }
 0x94c   :  { %1766 = vmatprep.subr.bf16.mxu0 %v1808_v59 }
 0x94e   :  { %1761 = vmatmul.mubr.msk.bf16.vlgmr.msra.gmra.mrb[20].mxu1 %vm262_vm3, %v1806_v13 }
 0x94f   :  { %1767 = vmatpush3.bf16.msra.mxu0 %v1808_v59 }
 0x950   :  { %1780 = vmatprep.subr.bf16.mxu0 %v1909_v38 }
 0xa1d   :  { %v1052_v22 = vpop.f32.mrb[16].mxu0 }
 0xa1e   :  { %v1053_v24 = vadd.f32 %v1052_v22, %v1003_v21  ;;  %v1756_v25 = vpop.f32.mrb[17].mxu0 }
 0xa1f   :  { %v1055_v17 = vpop.f32.mrb[18].mxu0 }
 0xa20   :  { %v2220_v9 = vadd.f32 %v1053_v24, %v2159_v23  ;;  %v1056_v20 = vadd.f32 %v1055_v17, %v1008_v28  ;;  %v1757_v14 = vpop.f32.mrb[19].mxu0 }
 0xa21   :  { %v1093_v31 = vpop.f32.mrb[20].mxu1 }
 0xa22   :  { %v2223_v30 = vadd.f32 %v1056_v20, %v2165_v27  ;;  %v1108_v32 = vsel %vm167_vm1, %v2220_v9, 0.0  ;;  %v1094_v33 = vadd.f32 %v1093_v31, %v1003_v21  ;;  %v1762_v34 = vpop.f32.mrb[21].mxu1 }
 0xa23   :  { %1109 = vadd.xlane.f32.xlu1 %v1108_v32  ;;  %v1096_v7 = vpop.f32.mrb[22].mxu1 }
 0xa24   :  { %v1111_v35 = vsel %vm167_vm1, %v2223_v30, 0.0  ;;  %v2230_v36 = vadd.f32 %v1094_v33, %v2163_v26  ;;  %v1097_v23 = vadd.f32 %v1096_v7, %v1008_v28  ;;  %v1763_v11 = vpop.f32.mrb[23].mxu1 }
 0xa25   :  { %1112 = vadd.xlane.f32.xlu0 %v1111_v35  ;;  %v1809_v35 = vld [vmem:[%s2336_s13 + $0x10] sm:$0xff]   ;;  %v1629_v11 = vld [vmem:[%s2335_s12 + $0x1] ss:$0 sm:$0xff] }
 0xa26   :  { %v2233_v27 = vadd.f32 %v1097_v23, %v2169_v29  ;;  %v1114_v37 = vsel %vm167_vm1, %v2230_v36, 0.0  ;;  %1772 = vmatprep.subr.bf16.mxu1 %v1809_v35  ;;  %v1810_v23 = vld [vmem:[%s2336_s13 + $0x18] sm:$0xff]  }
 0xa27   :  { %1773 = vmatpush3.bf16.msra.mxu1 %v1809_v35 }
 0xa28   :  { %v1117_v39 = vsel %vm167_vm1, %v2233_v27, 0.0  ;;  %1774 = vmatprep.subr.bf16.mxu1 %v1810_v23 }
 0xa29   :  { %1115 = vadd.xlane.f32.xlu0 %v1114_v37  ;;  %1118 = vadd.xlane.f32.xlu1 %v1117_v39 }
 0xa2b   :  { %1775 = vmatpush3.bf16.msra.mxu1 %v1810_v23 }
 0xab0   :  { %v1110_v40 = vpop.xlane.xlu1 %1109 }
 0xab1   :  { %v1120_v41 = vmul.f32 0.03125, %v1110_v40 }
 0xab2   :  { %v1113_v42 = vpop.xlane.xlu0 %1112 }
 0xab3   :  { %v1124_v26 = vsub.f32 %v2220_v9, %v1120_v41  ;;  %v1121_v43 = vmul.f32 0.03125, %v1113_v42 }
 0xab5   :  { %v1125_v44 = vsub.f32 %v2223_v30, %v1121_v43  ;;  %v1128_v45 = vmul.f32 %v1124_v26, %v1124_v26 }
 0xab6   :  { %v1116_v46 = vpop.xlane.xlu0 %1115  ;;  %v1119_v47 = vpop.xlane.xlu1 %1118 }
 0xab7   :  { %v1122_v29 = vmul.f32 0.03125, %v1116_v46  ;;  %v1132_v48 = vsel %vm167_vm1, %v1128_v45, 0.0  ;;  %v1129_v49 = vmul.f32 %v1125_v44, %v1125_v44  ;;  %v1123_v50 = vmul.f32 0.03125, %v1119_v47 }
 0xab8   :  { %1133 = vadd.xlane.f32.xlu0 %v1132_v48 }
 0xab9   :  { %v1126_v51 = vsub.f32 %v2230_v36, %v1122_v29  ;;  %v1135_v52 = vsel %vm167_vm1, %v1129_v49, 0.0  ;;  %v1127_v53 = vsub.f32 %v2233_v27, %v1123_v50 }
 0xaba   :  { %1136 = vadd.xlane.f32.xlu1 %v1135_v52 }
 0xabb   :  { %v1130_v54 = vmul.f32 %v1126_v51, %v1126_v51  ;;  %v1131_v55 = vmul.f32 %v1127_v53, %v1127_v53 }
 0xabd   :  { %v1138_v56 = vsel %vm167_vm1, %v1130_v54, 0.0  ;;  %v1141_v57 = vsel %vm167_vm1, %v1131_v55, 0.0 }
 0xabe   :  { %1139 = vadd.xlane.f32.xlu0 %v1138_v56  ;;  %1142 = vadd.xlane.f32.xlu1 %v1141_v57 }
 0xb45   :  { %v1134_v60 = vpop.xlane.xlu0 %1133 }
 0xb46   :  { %v1144_v61 = vmul.f32 0.03125, %v1134_v60 }
 0xb47   :  { %v1137_v62 = vpop.xlane.xlu1 %1136 }
 0xb48   :  { %v1148_v63 = vadd.f32 1e-05, %v1144_v61  ;;  %v1145_v0 = vmul.f32 0.03125, %v1137_v62 }
 0xb4a   :  { %1861 = vrsqrt.f32 %v1148_v63  ;;  %v1149_v1 = vadd.f32 1e-05, %v1145_v0 }
 0xb4b   :  { %v1140_v2 = vpop.xlane.xlu0 %1139  ;;  %v1143_v4 = vpop.xlane.xlu1 %1142 }
 0xb4c   :  { %1863 = vrsqrt.f32 %v1149_v1  ;;  %v1146_v3 = vmul.f32 0.03125, %v1140_v2  ;;  %v1147_v5 = vmul.f32 0.03125, %v1143_v4 }
 0xb4e   :  { %v1150_v6 = vadd.f32 1e-05, %v1146_v3  ;;  %v1151_v8 = vadd.f32 1e-05, %v1147_v5 }
 0xb50   :  { %1865 = vrsqrt.f32 %v1150_v6 }
 0xb51   :  { %1867 = vrsqrt.f32 %v1151_v8 }
 0xb54   :  { %v1862_v10 = vpop.eup %1861 }
 0xb55   :  { %v1156_v13 = vmul.f32 %v1862_v10, %v1124_v26 }
 0xb56   :  { %v1864_v15 = vpop.eup %1863 }
 0xb57   :  { %v1157_v16 = vmul.f32 %v1864_v15, %v1125_v44  ;;  %v1166_v18 = vmul.f32 %v1622_v12, %v1156_v13 }
 0xb59   :  { %v1167_v21 = vmul.f32 %v1622_v12, %v1157_v16  ;;  %v1176_v28 = vadd.f32 %v1623_v19, %v1166_v18 }
 0xb5a   :  { %v1866_v22 = vpop.eup %1865 }
 0xb5b   :  { %v1868_v24 = vpop.eup %1867  ;;  %v1158_v25 = vmul.f32 %v1866_v22, %v1126_v51  ;;  %v1177_v17 = vadd.f32 %v1623_v19, %v1167_v21 }
 0xb5c   :  { %v1159_v20 = vmul.f32 %v1868_v24, %v1127_v53 }
 0xb5d   :  { %v1168_v14 = vmul.f32 %v1622_v12, %v1158_v25  ;;  %v1180_v31 = vpack.c.bf16 %v1177_v17, %v1176_v28  ;;  %v1643_v17 = vld [vmem:[%s2337_s14 + $0x1] ss:$0 sm:$0xff] }
 0xb5e   :  { %v1169_v32 = vmul.f32 %v1622_v12, %v1159_v20 }
 0xb5f   :  { %1768 = vmatprep.mubr.msk.bf16.mxu0 %vm167_vm1, %v1180_v31  ;;  %v1178_v33 = vadd.f32 %v1623_v19, %v1168_v14 }
 0xb60   :  { %v1179_v34 = vadd.f32 %v1623_v19, %v1169_v32 }
 0xb62   :  { %v1181_v7 = vpack.c.bf16 %v1179_v34, %v1178_v33 }
 0xb64   :  { %1769 = vmatmul.mubr.msk.bf16.vlgmr.msra.gmra.mrb[20].mxu0 %vm167_vm1, %v1181_v7 }
 0xb65   :  { %1784 = vmatprep.mubr.msk.bf16.mxu0 %vm1910_vm2, %v1909_v38 }
 0xc37   :  { %v1770_v37 = vpop.f32.mrb[20].mxu0 }
 0xc38   :  { %v1256_v39 = vadd.f32 %v1770_v37, %v1629_v11  ;;  %v1247_v40 = vpop.f32.mrb[21].mxu0 }
 0xc39   :  { %v1248_v41 = vadd.f32 %v1629_v11, %v1247_v40  ;;  %v1771_v42 = vpop.f32.mrb[22].mxu0 }
 0xc3a   :  { %v1268_v26 = vmul.f32 %v1256_v39, %v1256_v39  ;;  %v1259_v43 = vadd.f32 %v1771_v42, %v1629_v11  ;;  %v1250_v44 = vpop.f32.mrb[23].mxu0  ;;  %v1264_v6 = vmul.f32 0.5, %v1256_v39 }
 0xc3b   :  { %v1266_v45 = vmul.f32 %v1248_v41, %v1248_v41  ;;  %v1251_v46 = vadd.f32 %v1629_v11, %v1250_v44  ;;  %v1262_v12 = vmul.f32 0.5, %v1248_v41 }
 0xc3c   :  { %v1272_v29 = vmul.f32 %v1268_v26, %v1256_v39  ;;  %v1269_v47 = vmul.f32 %v1259_v43, %v1259_v43  ;;  %v1265_v8 = vmul.f32 0.5, %v1259_v43 }
 0xc3d   :  { %v1270_v48 = vmul.f32 %v1266_v45, %v1248_v41  ;;  %v1267_v49 = vmul.f32 %v1251_v46, %v1251_v46  ;;  %v1263_v13 = vmul.f32 0.5, %v1251_v46 }
 0xc3e   :  { %v1276_v50 = vmul.f32 0.044715, %v1272_v29  ;;  %v1273_v51 = vmul.f32 %v1269_v47, %v1259_v43 }
 0xc3f   :  { %v1274_v52 = vmul.f32 0.044715, %v1270_v48  ;;  %v1271_v53 = vmul.f32 %v1267_v49, %v1251_v46 }
 0xc40   :  { %v1280_v54 = vadd.f32 %v1276_v50, %v1256_v39  ;;  %v1277_v55 = vmul.f32 0.044715, %v1273_v51 }
 0xc41   :  { %v1278_v56 = vadd.f32 %v1274_v52, %v1248_v41  ;;  %v1275_v57 = vmul.f32 0.044715, %v1271_v53 }
 0xc42   :  { %v1284_v58 = vmul.f32 0.7978846, %v1280_v54  ;;  %v1281_v59 = vadd.f32 %v1277_v55, %v1259_v43 }
 0xc43   :  { %v1282_v60 = vmul.f32 0.7978846, %v1278_v56  ;;  %v1279_v61 = vadd.f32 %v1275_v57, %v1251_v46  ;;  %v1811_v56 = vld [vmem:[%s2340_s17] sm:$0xff]   ;;  %v1812_v57 = vld [vmem:[%s2340_s17 + $0x8] sm:$0xff]  }
 0xc44   :  { %1869 = vtanh.f32 %v1284_v58  ;;  %v1285_v62 = vmul.f32 0.7978846, %v1281_v59  ;;  %1781 = vmatpush3.bf16.msra.mxu0 %v1811_v56 }
 0xc45   :  { %1871 = vtanh.f32 %v1282_v60  ;;  %v1283_v63 = vmul.f32 0.7978846, %v1279_v61  ;;  %1782 = vmatprep.subr.bf16.mxu0 %v1909_v38  ;;  %v1644_v38 = vld [vmem:[%s2338_s15] ss:$0 sm:$0xff] }
 0xc46   :  { %1873 = vtanh.f32 %v1285_v62 }
 0xc47   :  { %1875 = vtanh.f32 %v1283_v63 }
 0xc48   :  { %1783 = vmatpush3.bf16.msra.mxu0 %v1812_v57 }
 0xc4e   :  { %v1870_v0 = vpop.eup %1869 }
 0xc4f   :  { %v1872_v1 = vpop.eup %1871  ;;  %v1292_v2 = vadd.f32 1.0, %v1870_v0 }
 0xc50   :  { %v1874_v3 = vpop.eup %1873  ;;  %v1290_v4 = vadd.f32 1.0, %v1872_v1 }
 0xc51   :  { %v1876_v5 = vpop.eup %1875  ;;  %v1293_v10 = vadd.f32 1.0, %v1874_v3  ;;  %v1296_v16 = vmul.f32 %v1292_v2, %v1264_v6 }
 0xc52   :  { %v1291_v15 = vadd.f32 1.0, %v1876_v5  ;;  %v1294_v19 = vmul.f32 %v1290_v4, %v1262_v12  ;;  %v1645_v12 = vld [vmem:[%s2339_s16] ss:$0 sm:$0xff] }
 0xc53   :  { %v1297_v18 = vmul.f32 %v1293_v10, %v1265_v8 }
 0xc54   :  { %v1295_v21 = vmul.f32 %v1291_v15, %v1263_v13 }
 0xc55   :  { %v1299_v22 = vpack.c.bf16 %v1297_v18, %v1296_v16 }
 0xc56   :  { %v1298_v24 = vpack.c.bf16 %v1295_v21, %v1294_v19 }
 0xc58   :  { %1776 = vmatprep.mubr.msk.bf16.mxu1 %vm167_vm1, %v1298_v24 }
 0xc59   :  { %1777 = vmatmul.mubr.msk.bf16.vlgmr.msra.gmra.mrb[24].mxu1 %vm167_vm1, %v1299_v22 }
 0xd2c   :  { %v1778_v25 = vpop.f32.mrb[24].mxu1 }
 0xd2d   :  { %v1357_v28 = vpop.f32.mrb[25].mxu1  ;;  %v1374_v20 = vadd.f32 %v1778_v25, %v2230_v36 }
 0xd2e   :  { %v1372_v14 = vadd.f32 %v1357_v28, %v2220_v9  ;;  %v1779_v31 = vpop.f32.mrb[26].mxu1 }
 0xd2f   :  { %v1360_v32 = vpop.f32.mrb[27].mxu1  ;;  %v1375_v33 = vadd.f32 %v1779_v31, %v2233_v27  ;;  %v1386_v11 = vadd.f32 %v1643_v17, %v1374_v20 }
 0xd30   :  { %v1373_v34 = vadd.f32 %v1360_v32, %v2223_v30  ;;  %v1384_v7 = vadd.f32 %v1643_v17, %v1372_v14 }
 0xd31   :  { %v1387_v39 = vadd.f32 %v1643_v17, %v1375_v33  ;;  %v1396_v36 = vsel %vm167_vm1, %v1386_v11, 0.0 }
 0xd32   :  { %v1390_v35 = vsel %vm167_vm1, %v1384_v7, 0.0  ;;  %v1385_v23 = vadd.f32 %v1643_v17, %v1373_v34 }
 0xd33   :  { %1391 = vadd.xlane.f32.xlu0 %v1390_v35  ;;  %v1399_v9 = vsel %vm167_vm1, %v1387_v39, 0.0 }
 0xd34   :  { %v1393_v37 = vsel %vm167_vm1, %v1385_v23, 0.0 }
 0xd35   :  { %1394 = vadd.xlane.f32.xlu1 %v1393_v37 }
 0xd37   :  { %1397 = vadd.xlane.f32.xlu0 %v1396_v36 }
 0xd39   :  { %1400 = vadd.xlane.f32.xlu1 %v1399_v9 }
 0xdc0   :  { %v1392_v40 = vpop.xlane.xlu0 %1391 }
 0xdc1   :  { %v1402_v27 = vmul.f32 0.03125, %v1392_v40 }
 0xdc2   :  { %v1395_v41 = vpop.xlane.xlu1 %1394 }
 0xdc3   :  { %v1406_v30 = vsub.f32 %v1384_v7, %v1402_v27  ;;  %v1403_v42 = vmul.f32 0.03125, %v1395_v41 }
 0xdc4   :  { %v1398_v26 = vpop.xlane.xlu0 %1397 }
 0xdc5   :  { %v1407_v43 = vsub.f32 %v1385_v23, %v1403_v42  ;;  %v1404_v44 = vmul.f32 0.03125, %v1398_v26  ;;  %v1410_v45 = vmul.f32 %v1406_v30, %v1406_v30 }
 0xdc6   :  { %v1401_v46 = vpop.xlane.xlu1 %1400 }
 0xdc7   :  { %v1408_v29 = vsub.f32 %v1386_v11, %v1404_v44  ;;  %v1405_v47 = vmul.f32 0.03125, %v1401_v46  ;;  %v1414_v48 = vsel %vm167_vm1, %v1410_v45, 0.0  ;;  %v1411_v49 = vmul.f32 %v1407_v43, %v1407_v43 }
 0xdc8   :  { %1415 = vadd.xlane.f32.xlu0 %v1414_v48 }
 0xdc9   :  { %v1409_v50 = vsub.f32 %v1387_v39, %v1405_v47  ;;  %v1417_v51 = vsel %vm167_vm1, %v1411_v49, 0.0  ;;  %v1412_v52 = vmul.f32 %v1408_v29, %v1408_v29 }
 0xdca   :  { %1418 = vadd.xlane.f32.xlu1 %v1417_v51 }
 0xdcb   :  { %v1420_v53 = vsel %vm167_vm1, %v1412_v52, 0.0  ;;  %v1413_v54 = vmul.f32 %v1409_v50, %v1409_v50 }
 0xdcc   :  { %1421 = vadd.xlane.f32.xlu0 %v1420_v53 }
 0xdcd   :  { %v1423_v55 = vsel %vm167_vm1, %v1413_v54, 0.0 }
 0xdce   :  { %1424 = vadd.xlane.f32.xlu1 %v1423_v55 }
 0xe55   :  { %v1416_v58 = vpop.xlane.xlu0 %1415 }
 0xe56   :  { %v1426_v59 = vmul.f32 0.03125, %v1416_v58 }
 0xe57   :  { %v1419_v60 = vpop.xlane.xlu1 %1418 }
 0xe58   :  { %v1430_v61 = vadd.f32 1e-05, %v1426_v59  ;;  %v1427_v62 = vmul.f32 0.03125, %v1419_v60 }
 0xe59   :  { %v1422_v63 = vpop.xlane.xlu0 %1421 }
 0xe5a   :  { %1877 = vrsqrt.f32 %v1430_v61  ;;  %v1431_v0 = vadd.f32 1e-05, %v1427_v62  ;;  %v1428_v1 = vmul.f32 0.03125, %v1422_v63 }
 0xe5b   :  { %v1425_v2 = vpop.xlane.xlu1 %1424 }
 0xe5c   :  { %1879 = vrsqrt.f32 %v1431_v0  ;;  %v1432_v3 = vadd.f32 1e-05, %v1428_v1  ;;  %v1429_v4 = vmul.f32 0.03125, %v1425_v2 }
 0xe5e   :  { %1881 = vrsqrt.f32 %v1432_v3  ;;  %v1433_v5 = vadd.f32 1e-05, %v1429_v4 }
 0xe60   :  { %1883 = vrsqrt.f32 %v1433_v5 }
 0xe64   :  { %v1878_v6 = vpop.eup %1877 }
 0xe65   :  { %v1438_v8 = vmul.f32 %v1878_v6, %v1406_v30 }
 0xe66   :  { %v1880_v10 = vpop.eup %1879 }
 0xe67   :  { %v1448_v13 = vmul.f32 %v1644_v38, %v1438_v8  ;;  %v1439_v15 = vmul.f32 %v1880_v10, %v1407_v43 }
 0xe68   :  { %v1882_v16 = vpop.eup %1881 }
 0xe69   :  { %v1458_v18 = vadd.f32 %v1645_v12, %v1448_v13  ;;  %v1449_v19 = vmul.f32 %v1644_v38, %v1439_v15  ;;  %v1440_v21 = vmul.f32 %v1882_v16, %v1408_v29 }
 0xe6a   :  { %v1884_v22 = vpop.eup %1883 }
 0xe6b   :  { %v1459_v24 = vadd.f32 %v1645_v12, %v1449_v19  ;;  %v1450_v25 = vmul.f32 %v1644_v38, %v1440_v21  ;;  %v1441_v28 = vmul.f32 %v1884_v22, %v1409_v50  ;;  %v1462_v17 = vsel %vm167_vm1, %v1458_v18, 0.0  ;;  %v1646_v50 = vld [vmem:[%s2341_s18] ss:$0 sm:$0xff] }
 0xe6d   :  { %v1463_v20 = vsel %vm167_vm1, %v1459_v24, 0.0  ;;  %v1460_v14 = vadd.f32 %v1645_v12, %v1450_v25  ;;  %v1451_v31 = vmul.f32 %v1644_v38, %v1441_v28 }
 0xe6e   :  { %v1464_v32 = vadd.f32 %v1463_v20, %v1462_v17 }
 0xe6f   :  { %v1461_v33 = vadd.f32 %v1645_v12, %v1451_v31  ;;  %v1471_v7 = vsel %vm167_vm1, %v1460_v14, 0.0 }
 0xe70   :  { %v1465_v34 = vrot.slane %v1464_v32, 4 }
 0xe71   :  { %v1472_v35 = vsel %vm167_vm1, %v1461_v33, 0.0 }
 0xe72   :  { %v1466_v23 = vadd.f32 %v1465_v34, %v1464_v32  ;;  %v1473_v11 = vadd.f32 %v1472_v35, %v1471_v7 }
 0xe74   :  { %v1474_v37 = vrot.slane %v1473_v11, 4  ;;  %v1467_v39 = vrot.slane %v1466_v23, 2 }
 0xe76   :  { %v1475_v36 = vadd.f32 %v1474_v37, %v1473_v11  ;;  %v1468_v9 = vadd.f32 %v1467_v39, %v1466_v23 }
 0xe78   :  { %v1469_v40 = vrot.slane %v1468_v9, 1  ;;  %v1476_v27 = vrot.slane %v1475_v36, 2 }
 0xe7a   :  { %v1470_v41 = vadd.f32 %v1469_v40, %v1468_v9  ;;  %v1477_v30 = vadd.f32 %v1476_v27, %v1475_v36 }
 0xe7c   :  { %v1478_v42 = vrot.slane %v1477_v30, 1  ;;  %v1481_v26 = vmul.f32 0.0625, %v1470_v41 }
 0xe7e   :  { %v1479_v43 = vadd.f32 %v1478_v42, %v1477_v30  ;;  %v1483_v45 = vpack.c.bf16 %v1481_v26, %v1481_v26 }
 0xe80   :  { %v1482_v44 = vmul.f32 0.0625, %v1479_v43  ;;  %v1498_v29 = vunpack.c.l.b16 %v1483_v45 }
 0xe82   :  { %v1484_v46 = vpack.c.bf16 %v1482_v44, %v1482_v44 }
 0xe84   :  { %v1499_v47 = vunpack.c.l.b16 %v1484_v46 }
 0xe86   :  { %v1501_v48 = vsel %vm1500_vm4, %v1499_v47, %v1498_v29 }
 0xe87   :  { %v1502_v49 = vpack.c.b16 %v1501_v48, %v1501_v48 }
 0xe89   :  { %1785 = vmatmul.mubr.msk.bf16.vlgmr.msra.gmra.mrb[24].mxu0 %vm167_vm1, %v1502_v49 }
 0xf5c   :  { %v1552_v51 = vpop.f32.mrb[24].mxu0 }
 0xf5d   :  { %v1553_v52 = vadd.f32 %v1646_v50, %v1552_v51  ;;  %v1786_v53 = vpop.f32.mrb[25].mxu0 }
 0xf5e   :  { %v1555_v54 = vpop.f32.mrb[26].mxu0 }
 0xf5f   :  { %v1787_v55 = vpop.f32.mrb[27].mxu0  ;;  %1559 = vst.msk [vmem:[#allocation2] sm:$0x3] %vm1558_vm5, %v1553_v52 }
 0xf60   :  { %1896 = shalt.err (!%p1893_p4)
}
 0xf61   :  { %s1897_s18 = scalar_lea.hbm %s2342_s19, 32 }
 0xf62   :  { %p1898_p5 = scmp.ne.s32.totalorder %s2342_s19, %s1897_s18  ;;  %p1901_p6 = scmp.lt.u32.totalorder %s1897_s18, %s2342_s19 }
 0xf64   :  { %p1903_p7 = pnand %p1901_p6, %p1898_p5 }
 0xf66   :  { %1906 = shalt.err (!%p1903_p7)
}
 0xf67   :  { %1569 = dma.vmem_to_hbm [thread:$0]  %s1567_s4, 32, %s2342_s19, [#allocation3]  }
 0xf68   :  { %1907 = dma.done.wait [#allocation3], 32  }
 0xf69   :  { %1908 = vsyncadd [#allocation3], 4294967264 }
 0xf6a   :  { %1573 = vsyncpa [#allocation3], 1 }

</bundles_post_ra>
